<compile_context>
chip_gen: v5e
topology: v5e:2x2
jax: 0.10.0
libtpu: 0.0.40
codegen_flags: <defaults>
</compile_context>

<pallas_src>
import functools

import jax
import jax.numpy as jnp
from jax.experimental import pallas as pl
from jax.experimental.pallas import tpu as pltpu

NODE_TYPES = ("pfas_sites", "gw_wells", "sw_stations")
NT_INDEX = {nt: i for i, nt in enumerate(NODE_TYPES)}

EDGE_TYPES = [
    ("pfas_sites", "dis_edge", "gw_wells"),
    ("gw_wells", "dis_edge", "pfas_sites"),
    ("pfas_sites", "dis_edge", "sw_stations"),
    ("sw_stations", "dis_edge", "pfas_sites"),
    ("sw_stations", "dis_edge", "gw_wells"),
    ("gw_wells", "dis_edge", "sw_stations"),
    ("gw_wells", "dis_edge", "gw_wells"),
    ("gw_wells", "self_loop", "gw_wells"),
    ("sw_stations", "self_loop", "sw_stations"),
    ("pfas_sites", "self_loop", "pfas_sites"),
]
DIS_EDGE_TYPES = tuple(et for et in EDGE_TYPES if et[1] != "self_loop")
ADJ_INDEX = {et: i for i, et in enumerate(DIS_EDGE_TYPES)}
# number of edge types feeding each destination type (for HeteroConv 'mean')
DST_COUNT = {nt: sum(1 for et in EDGE_TYPES if et[2] == nt) for nt in NODE_TYPES}

C_PAD = 128      # channel padding -> lane-dense layout; 2*C_PAD = 256 = v6e/v7x MXU width
HEAD_PAD = 128   # head output lane padding (true head dim is 1, sliced in the wrapper)


def _round_up(x, m):
    return ((x + m - 1) // m) * m


# ---------------------------- the fused Pallas kernel ----------------------------

def _fused_model_kernel(x_ref, adj_ref, w1_ref, b1_ref, w2_ref, b2_ref,
                        wh_ref, bh_ref, pfas_ref, gw_ref, sw_ref, *, aggregation):
    """Both HeteroConv layers + ReLUs + both Linear heads, all in VMEM."""

    def hetero_layer(feats, w_ref, b_ref):
        acc = {nt: None for nt in NODE_TYPES}
        for e_idx, et in enumerate(EDGE_TYPES):
            src_t, rel, dst_t = et
            x_src = feats[src_t]                                   # bf16 [N, C_PAD]
            x_dst = feats[dst_t]                                   # bf16 [N, C_PAD]
            if rel == "self_loop":
                # identity self-loop graph: mean over the single incoming edge == x
                agg = x_src
            else:
                agg = jnp.dot(adj_ref[ADJ_INDEX[et]], x_src,
                              preferred_element_type=jnp.float32
                              ).astype(jnp.bfloat16)
            # single fat matmul for both SAGE branches: [agg, x_dst] @ [Wl; Wr] + b
            inp = jnp.concatenate([agg, x_dst], axis=-1)           # bf16 [N, 2*C_PAD]
            y = jnp.dot(inp, w_ref[e_idx],
                        preferred_element_type=jnp.float32) + b_ref[e_idx]
            acc[dst_t] = y if acc[dst_t] is None else acc[dst_t] + y
        out = {}
        for nt in NODE_TYPES:
            v = acc[nt]
            if aggregation == "mean":
                v = v * (1.0 / DST_COUNT[nt])
            out[nt] = jnp.maximum(v, 0.0)                          # f32, ReLU
        return out

    feats0 = {nt: x_ref[NT_INDEX[nt]] for nt in NODE_TYPES}        # bf16
    h1 = hetero_layer(feats0, w1_ref, b1_ref)
    h1 = {nt: v.astype(jnp.bfloat16) for nt, v in h1.items()}
    h2 = hetero_layer(h1, w2_ref, b2_ref)

    # outputs (all lane-dense, width 128); heads fused as an epilogue dot
    pfas_ref[...] = h2["pfas_sites"]
    gw_ref[...] = jnp.dot(h2["gw_wells"].astype(jnp.bfloat16), wh_ref[0],
                          preferred_element_type=jnp.float32) + bh_ref[0]
    sw_ref[...] = jnp.dot(h2["sw_stations"].astype(jnp.bfloat16), wh_ref[1],
                          preferred_element_type=jnp.float32) + bh_ref[1]


def forward(packed_params, X, ADJ, num_nodes, out_channels, aggregation="sum"):
    n_pad = X.shape[1]
    vmem = pl.BlockSpec(memory_space=pltpu.MemorySpace.VMEM)
    pfas_h, gw_head, sw_head = pl.pallas_call(
        functools.partial(_fused_model_kernel, aggregation=aggregation),
        out_shape=(
            jax.ShapeDtypeStruct((n_pad, C_PAD), jnp.float32),
            jax.ShapeDtypeStruct((n_pad, HEAD_PAD), jnp.float32),
            jax.ShapeDtypeStruct((n_pad, HEAD_PAD), jnp.float32),
        ),
        in_specs=[vmem] * 8,
        out_specs=(vmem, vmem, vmem),
    )(X, ADJ, packed_params["W1"], packed_params["B1"],
      packed_params["W2"], packed_params["B2"],
      packed_params["WH"], packed_params["BH"])
    return {
        "pfas_sites": pfas_h[:num_nodes["pfas_sites"], :out_channels],
        "gw_wells": gw_head[:num_nodes["gw_wells"], :1],
        "sw_stations": sw_head[:num_nodes["sw_stations"], :1],
    }


# ------------------------------- glue (plain JAX) --------------------------------

def mean_adjacency(edge_index, n_src, n_dst, n_pad):
    # TODO(synk): sparse edge_index scatter -> dense row-normalized adjacency stays in
    # plain JAX; a CSR gather kernel only pays off at large scale.
    src, dst = edge_index[0], edge_index[1]
    a = jnp.zeros((n_dst, n_src), jnp.float32).at[dst, src].add(1.0)
    a = a / jnp.maximum(a.sum(axis=1, keepdims=True), 1.0)
    return jnp.zeros((n_pad, n_pad), jnp.float32).at[:n_dst, :n_src].set(a
        ).astype(jnp.bfloat16)


def pack_inputs(x_dict, edge_index_dict, num_nodes):
    """Pad node features to a common [n_pad, C_PAD] bf16 slab and stack the
    row-normalized dis_edge adjacencies (self_loops are handled analytically)."""
    n_pad = max(_round_up(n, 8) for n in num_nodes.values())
    xs = []
    for nt in NODE_TYPES:
        x = x_dict[nt]
        xs.append(jnp.zeros((n_pad, C_PAD), jnp.float32
                            ).at[:x.shape[0], :x.shape[1]].set(x))
    X = jnp.stack(xs).astype(jnp.bfloat16)                           # [3, n_pad, C_PAD]
    ADJ = jnp.stack([
        mean_adjacency(edge_index_dict[et], num_nodes[et[0]], num_nodes[et[2]], n_pad)
        for et in DIS_EDGE_TYPES])                                   # [7, n_pad, n_pad]
    return X, ADJ


def init_sage_params(key, in_ch, out_ch):
    k1, k2, k3 = jax.random.split(key, 3)
    return {
        "Wl": jax.random.normal(k1, (in_ch, out_ch), jnp.float32) * 0.1,
        "Wr": jax.random.normal(k2, (in_ch, out_ch), jnp.float32) * 0.1,
        "b": jax.random.normal(k3, (out_ch,), jnp.float32) * 0.1,
    }


def init_params(key, in_channels_dict, out_channels):
    params = {"conv1": {}, "conv2": {}}
    for i, et in enumerate(EDGE_TYPES):
        src = et[0]
        params["conv1"][et] = init_sage_params(
            jax.random.fold_in(key, i), in_channels_dict[src], out_channels)
        params["conv2"][et] = init_sage_params(
            jax.random.fold_in(key, 100 + i), out_channels, out_channels)
    for j, name in enumerate(("gw_wells_linear", "sw_stations_linear")):
        kw, kb = jax.random.split(jax.random.fold_in(key, 500 + j))
        params[name] = {
            "W": jax.random.normal(kw, (out_channels, 1), jnp.float32) * 0.1,
            "b": jax.random.normal(kb, (1,), jnp.float32) * 0.1,
        }
    return params


def _pack_layer(layer_params, out_channels):
    ws, bs = [], []
    for et in EDGE_TYPES:
        p = layer_params[et]
        in_l, in_r = p["Wl"].shape[0], p["Wr"].shape[0]
        w = jnp.zeros((2 * C_PAD, C_PAD), jnp.float32)
        w = w.at[:in_l, :out_channels].set(p["Wl"])                  # lin_l block
        w = w.at[C_PAD:C_PAD + in_r, :out_channels].set(p["Wr"])     # lin_r block
        ws.append(w)
        bs.append(jnp.zeros((1, C_PAD), jnp.float32).at[0, :out_channels].set(p["b"]))
    return jnp.stack(ws).astype(jnp.bfloat16), jnp.stack(bs)


def pack_params(params, out_channels):
    w1, b1 = _pack_layer(params["conv1"], out_channels)
    w2, b2 = _pack_layer(params["conv2"], out_channels)
    whs, bhs = [], []
    for name in ("gw_wells_linear", "sw_stations_linear"):
        W, b = params[name]["W"], params[name]["b"]
        whs.append(jnp.zeros((C_PAD, HEAD_PAD), jnp.float32).at[:W.shape[0], :1].set(W))
        bhs.append(jnp.zeros((1, HEAD_PAD), jnp.float32).at[0, :1].set(b))
    return {"W1": w1, "B1": b1, "W2": w2, "B2": b2,
            "WH": jnp.stack(whs).astype(jnp.bfloat16), "BH": jnp.stack(bhs)}


# ------------------------------------- main ---------------------------------------

if __name__ == "__main__":
    key = jax.random.PRNGKey(0)

    num_nodes = {"pfas_sites": 8, "gw_wells": 16, "sw_stations": 8}
    in_channels = 8
    out_channels = 16
    in_channels_dict = {k: in_channels for k in num_nodes}

    # deterministic node features
    x_dict = {
        nt: jax.random.normal(
            jax.random.fold_in(key, 1000 + i),
            (num_nodes[nt], in_channels), jnp.float32)
        for i, nt in enumerate(NODE_TYPES)
    }

    # deterministic edge indices (random for dis_edge, identity for self_loop)
    edge_index_dict = {}
    for i, et in enumerate(EDGE_TYPES):
        src_t, rel, dst_t = et
        if rel == "self_loop":
            idx = jnp.arange(num_nodes[src_t], dtype=jnp.int32)
            edge_index_dict[et] = jnp.stack([idx, idx])
        else:
            ks, kd = jax.random.split(jax.random.fold_in(key, 2000 + i))
            num_edges = 24
            s = jax.random.randint(ks, (num_edges,), 0, num_nodes[src_t], jnp.int32)
            d = jax.random.randint(kd, (num_edges,), 0, num_nodes[dst_t], jnp.int32)
            edge_index_dict[et] = jnp.stack([s, d])

    params = init_params(jax.random.fold_in(key, 7), in_channels_dict, out_channels)
    packed_params = pack_params(params, out_channels)
    X, ADJ = pack_inputs(x_dict, edge_index_dict, num_nodes)

    out = forward(packed_params, X, ADJ, num_nodes, out_channels, aggregation="sum")
    out = jax.block_until_ready(out)

    assert out["gw_wells"].shape == (num_nodes["gw_wells"], 1)
    assert out["sw_stations"].shape == (num_nodes["sw_stations"], 1)
    assert out["pfas_sites"].shape == (num_nodes["pfas_sites"], out_channels)
    print("KERNEL_OK")
</pallas_src>

<mosaic_0001>
module attributes {stable_mosaic.version = 11 : i64} {
  func.func @_fused_model_kernel(%arg0: memref<3x16x128xbf16, #tpu.memory_space<vmem>>, %arg1: memref<7x16x16xbf16, #tpu.memory_space<vmem>>, %arg2: memref<10x256x128xbf16, #tpu.memory_space<vmem>>, %arg3: memref<10x1x128xf32, #tpu.memory_space<vmem>>, %arg4: memref<10x256x128xbf16, #tpu.memory_space<vmem>>, %arg5: memref<10x1x128xf32, #tpu.memory_space<vmem>>, %arg6: memref<2x128x128xbf16, #tpu.memory_space<vmem>>, %arg7: memref<2x1x128xf32, #tpu.memory_space<vmem>>, %arg8: memref<16x128xf32, #tpu.memory_space<vmem>>, %arg9: memref<16x128xf32, #tpu.memory_space<vmem>>, %arg10: memref<16x128xf32, #tpu.memory_space<vmem>>) attributes {dimension_semantics = [], scalar_prefetch = 0 : i64, scratch_operands = 0 : i64, tpu.core_type = #tpu.core_type<tc>} {
    %c0 = arith.constant 0 : index
    %c0_0 = arith.constant 0 : index
    %c0_1 = arith.constant 0 : index
    %0 = vector.load %arg0[%c0, %c0_0, %c0_1] : memref<3x16x128xbf16, #tpu.memory_space<vmem>>, vector<1x16x128xbf16>
    %1 = vector.shape_cast %0 : vector<1x16x128xbf16> to vector<16x128xbf16>
    %c1 = arith.constant 1 : index
    %c0_2 = arith.constant 0 : index
    %c0_3 = arith.constant 0 : index
    %2 = vector.load %arg0[%c1, %c0_2, %c0_3] : memref<3x16x128xbf16, #tpu.memory_space<vmem>>, vector<1x16x128xbf16>
    %3 = vector.shape_cast %2 : vector<1x16x128xbf16> to vector<16x128xbf16>
    %c2 = arith.constant 2 : index
    %c0_4 = arith.constant 0 : index
    %c0_5 = arith.constant 0 : index
    %4 = vector.load %arg0[%c2, %c0_4, %c0_5] : memref<3x16x128xbf16, #tpu.memory_space<vmem>>, vector<1x16x128xbf16>
    %5 = vector.shape_cast %4 : vector<1x16x128xbf16> to vector<16x128xbf16>
    %c0_6 = arith.constant 0 : index
    %c0_7 = arith.constant 0 : index
    %c0_8 = arith.constant 0 : index
    %6 = vector.load %arg1[%c0_6, %c0_7, %c0_8] : memref<7x16x16xbf16, #tpu.memory_space<vmem>>, vector<1x16x16xbf16>
    %7 = vector.shape_cast %6 : vector<1x16x16xbf16> to vector<16x16xbf16>
    %cst = arith.constant dense<0.000000e+00> : vector<16x128xf32>
    %8 = tpu.matmul %7, %1, %cst {dimension_numbers = #tpu.dot_dimension_numbers<[1], [0], [0], [1], [0, 0, 1, 1], [], []>} : vector<16x16xbf16>, vector<16x128xbf16>, vector<16x128xf32> -> vector<16x128xf32>
    %9 = arith.truncf %8 : vector<16x128xf32> to vector<16x128xbf16>
    %10 = tpu.concatenate %9, %3 in 1 : vector<16x128xbf16>, vector<16x128xbf16> -> vector<16x256xbf16>
    %c0_9 = arith.constant 0 : index
    %c0_10 = arith.constant 0 : index
    %c0_11 = arith.constant 0 : index
    %11 = vector.load %arg2[%c0_9, %c0_10, %c0_11] : memref<10x256x128xbf16, #tpu.memory_space<vmem>>, vector<1x256x128xbf16>
    %12 = vector.shape_cast %11 : vector<1x256x128xbf16> to vector<256x128xbf16>
    %cst_12 = arith.constant dense<0.000000e+00> : vector<16x128xf32>
    %13 = tpu.matmul %10, %12, %cst_12 {dimension_numbers = #tpu.dot_dimension_numbers<[1], [0], [0], [1], [0, 0, 1, 1], [], []>} : vector<16x256xbf16>, vector<256x128xbf16>, vector<16x128xf32> -> vector<16x128xf32>
    %c0_13 = arith.constant 0 : index
    %c0_14 = arith.constant 0 : index
    %c0_15 = arith.constant 0 : index
    %14 = vector.load %arg3[%c0_13, %c0_14, %c0_15] : memref<10x1x128xf32, #tpu.memory_space<vmem>>, vector<1x1x128xf32>
    %15 = vector.shape_cast %14 : vector<1x1x128xf32> to vector<1x128xf32>
    %16 = vector.broadcast %15 : vector<1x128xf32> to vector<16x128xf32>
    %17 = arith.addf %13, %16 : vector<16x128xf32>
    %c1_16 = arith.constant 1 : index
    %c0_17 = arith.constant 0 : index
    %c0_18 = arith.constant 0 : index
    %18 = vector.load %arg1[%c1_16, %c0_17, %c0_18] : memref<7x16x16xbf16, #tpu.memory_space<vmem>>, vector<1x16x16xbf16>
    %19 = vector.shape_cast %18 : vector<1x16x16xbf16> to vector<16x16xbf16>
    %cst_19 = arith.constant dense<0.000000e+00> : vector<16x128xf32>
    %20 = tpu.matmul %19, %3, %cst_19 {dimension_numbers = #tpu.dot_dimension_numbers<[1], [0], [0], [1], [0, 0, 1, 1], [], []>} : vector<16x16xbf16>, vector<16x128xbf16>, vector<16x128xf32> -> vector<16x128xf32>
    %21 = arith.truncf %20 : vector<16x128xf32> to vector<16x128xbf16>
    %22 = tpu.concatenate %21, %1 in 1 : vector<16x128xbf16>, vector<16x128xbf16> -> vector<16x256xbf16>
    %c1_20 = arith.constant 1 : index
    %c0_21 = arith.constant 0 : index
    %c0_22 = arith.constant 0 : index
    %23 = vector.load %arg2[%c1_20, %c0_21, %c0_22] : memref<10x256x128xbf16, #tpu.memory_space<vmem>>, vector<1x256x128xbf16>
    %24 = vector.shape_cast %23 : vector<1x256x128xbf16> to vector<256x128xbf16>
    %cst_23 = arith.constant dense<0.000000e+00> : vector<16x128xf32>
    %25 = tpu.matmul %22, %24, %cst_23 {dimension_numbers = #tpu.dot_dimension_numbers<[1], [0], [0], [1], [0, 0, 1, 1], [], []>} : vector<16x256xbf16>, vector<256x128xbf16>, vector<16x128xf32> -> vector<16x128xf32>
    %c1_24 = arith.constant 1 : index
    %c0_25 = arith.constant 0 : index
    %c0_26 = arith.constant 0 : index
    %26 = vector.load %arg3[%c1_24, %c0_25, %c0_26] : memref<10x1x128xf32, #tpu.memory_space<vmem>>, vector<1x1x128xf32>
    %27 = vector.shape_cast %26 : vector<1x1x128xf32> to vector<1x128xf32>
    %28 = vector.broadcast %27 : vector<1x128xf32> to vector<16x128xf32>
    %29 = arith.addf %25, %28 : vector<16x128xf32>
    %c2_27 = arith.constant 2 : index
    %c0_28 = arith.constant 0 : index
    %c0_29 = arith.constant 0 : index
    %30 = vector.load %arg1[%c2_27, %c0_28, %c0_29] : memref<7x16x16xbf16, #tpu.memory_space<vmem>>, vector<1x16x16xbf16>
    %31 = vector.shape_cast %30 : vector<1x16x16xbf16> to vector<16x16xbf16>
    %cst_30 = arith.constant dense<0.000000e+00> : vector<16x128xf32>
    %32 = tpu.matmul %31, %1, %cst_30 {dimension_numbers = #tpu.dot_dimension_numbers<[1], [0], [0], [1], [0, 0, 1, 1], [], []>} : vector<16x16xbf16>, vector<16x128xbf16>, vector<16x128xf32> -> vector<16x128xf32>
    %33 = arith.truncf %32 : vector<16x128xf32> to vector<16x128xbf16>
    %34 = tpu.concatenate %33, %5 in 1 : vector<16x128xbf16>, vector<16x128xbf16> -> vector<16x256xbf16>
    %c2_31 = arith.constant 2 : index
    %c0_32 = arith.constant 0 : index
    %c0_33 = arith.constant 0 : index
    %35 = vector.load %arg2[%c2_31, %c0_32, %c0_33] : memref<10x256x128xbf16, #tpu.memory_space<vmem>>, vector<1x256x128xbf16>
    %36 = vector.shape_cast %35 : vector<1x256x128xbf16> to vector<256x128xbf16>
    %cst_34 = arith.constant dense<0.000000e+00> : vector<16x128xf32>
    %37 = tpu.matmul %34, %36, %cst_34 {dimension_numbers = #tpu.dot_dimension_numbers<[1], [0], [0], [1], [0, 0, 1, 1], [], []>} : vector<16x256xbf16>, vector<256x128xbf16>, vector<16x128xf32> -> vector<16x128xf32>
    %c2_35 = arith.constant 2 : index
    %c0_36 = arith.constant 0 : index
    %c0_37 = arith.constant 0 : index
    %38 = vector.load %arg3[%c2_35, %c0_36, %c0_37] : memref<10x1x128xf32, #tpu.memory_space<vmem>>, vector<1x1x128xf32>
    %39 = vector.shape_cast %38 : vector<1x1x128xf32> to vector<1x128xf32>
    %40 = vector.broadcast %39 : vector<1x128xf32> to vector<16x128xf32>
    %41 = arith.addf %37, %40 : vector<16x128xf32>
    %c3 = arith.constant 3 : index
    %c0_38 = arith.constant 0 : index
    %c0_39 = arith.constant 0 : index
    %42 = vector.load %arg1[%c3, %c0_38, %c0_39] : memref<7x16x16xbf16, #tpu.memory_space<vmem>>, vector<1x16x16xbf16>
    %43 = vector.shape_cast %42 : vector<1x16x16xbf16> to vector<16x16xbf16>
    %cst_40 = arith.constant dense<0.000000e+00> : vector<16x128xf32>
    %44 = tpu.matmul %43, %5, %cst_40 {dimension_numbers = #tpu.dot_dimension_numbers<[1], [0], [0], [1], [0, 0, 1, 1], [], []>} : vector<16x16xbf16>, vector<16x128xbf16>, vector<16x128xf32> -> vector<16x128xf32>
    %45 = arith.truncf %44 : vector<16x128xf32> to vector<16x128xbf16>
    %46 = tpu.concatenate %45, %1 in 1 : vector<16x128xbf16>, vector<16x128xbf16> -> vector<16x256xbf16>
    %c3_41 = arith.constant 3 : index
    %c0_42 = arith.constant 0 : index
    %c0_43 = arith.constant 0 : index
    %47 = vector.load %arg2[%c3_41, %c0_42, %c0_43] : memref<10x256x128xbf16, #tpu.memory_space<vmem>>, vector<1x256x128xbf16>
    %48 = vector.shape_cast %47 : vector<1x256x128xbf16> to vector<256x128xbf16>
    %cst_44 = arith.constant dense<0.000000e+00> : vector<16x128xf32>
    %49 = tpu.matmul %46, %48, %cst_44 {dimension_numbers = #tpu.dot_dimension_numbers<[1], [0], [0], [1], [0, 0, 1, 1], [], []>} : vector<16x256xbf16>, vector<256x128xbf16>, vector<16x128xf32> -> vector<16x128xf32>
    %c3_45 = arith.constant 3 : index
    %c0_46 = arith.constant 0 : index
    %c0_47 = arith.constant 0 : index
    %50 = vector.load %arg3[%c3_45, %c0_46, %c0_47] : memref<10x1x128xf32, #tpu.memory_space<vmem>>, vector<1x1x128xf32>
    %51 = vector.shape_cast %50 : vector<1x1x128xf32> to vector<1x128xf32>
    %52 = vector.broadcast %51 : vector<1x128xf32> to vector<16x128xf32>
    %53 = arith.addf %49, %52 : vector<16x128xf32>
    %54 = arith.addf %29, %53 : vector<16x128xf32>
    %c4 = arith.constant 4 : index
    %c0_48 = arith.constant 0 : index
    %c0_49 = arith.constant 0 : index
    %55 = vector.load %arg1[%c4, %c0_48, %c0_49] : memref<7x16x16xbf16, #tpu.memory_space<vmem>>, vector<1x16x16xbf16>
    %56 = vector.shape_cast %55 : vector<1x16x16xbf16> to vector<16x16xbf16>
    %cst_50 = arith.constant dense<0.000000e+00> : vector<16x128xf32>
    %57 = tpu.matmul %56, %5, %cst_50 {dimension_numbers = #tpu.dot_dimension_numbers<[1], [0], [0], [1], [0, 0, 1, 1], [], []>} : vector<16x16xbf16>, vector<16x128xbf16>, vector<16x128xf32> -> vector<16x128xf32>
    %58 = arith.truncf %57 : vector<16x128xf32> to vector<16x128xbf16>
    %59 = tpu.concatenate %58, %3 in 1 : vector<16x128xbf16>, vector<16x128xbf16> -> vector<16x256xbf16>
    %c4_51 = arith.constant 4 : index
    %c0_52 = arith.constant 0 : index
    %c0_53 = arith.constant 0 : index
    %60 = vector.load %arg2[%c4_51, %c0_52, %c0_53] : memref<10x256x128xbf16, #tpu.memory_space<vmem>>, vector<1x256x128xbf16>
    %61 = vector.shape_cast %60 : vector<1x256x128xbf16> to vector<256x128xbf16>
    %cst_54 = arith.constant dense<0.000000e+00> : vector<16x128xf32>
    %62 = tpu.matmul %59, %61, %cst_54 {dimension_numbers = #tpu.dot_dimension_numbers<[1], [0], [0], [1], [0, 0, 1, 1], [], []>} : vector<16x256xbf16>, vector<256x128xbf16>, vector<16x128xf32> -> vector<16x128xf32>
    %c4_55 = arith.constant 4 : index
    %c0_56 = arith.constant 0 : index
    %c0_57 = arith.constant 0 : index
    %63 = vector.load %arg3[%c4_55, %c0_56, %c0_57] : memref<10x1x128xf32, #tpu.memory_space<vmem>>, vector<1x1x128xf32>
    %64 = vector.shape_cast %63 : vector<1x1x128xf32> to vector<1x128xf32>
    %65 = vector.broadcast %64 : vector<1x128xf32> to vector<16x128xf32>
    %66 = arith.addf %62, %65 : vector<16x128xf32>
    %67 = arith.addf %17, %66 : vector<16x128xf32>
    %c5 = arith.constant 5 : index
    %c0_58 = arith.constant 0 : index
    %c0_59 = arith.constant 0 : index
    %68 = vector.load %arg1[%c5, %c0_58, %c0_59] : memref<7x16x16xbf16, #tpu.memory_space<vmem>>, vector<1x16x16xbf16>
    %69 = vector.shape_cast %68 : vector<1x16x16xbf16> to vector<16x16xbf16>
    %cst_60 = arith.constant dense<0.000000e+00> : vector<16x128xf32>
    %70 = tpu.matmul %69, %3, %cst_60 {dimension_numbers = #tpu.dot_dimension_numbers<[1], [0], [0], [1], [0, 0, 1, 1], [], []>} : vector<16x16xbf16>, vector<16x128xbf16>, vector<16x128xf32> -> vector<16x128xf32>
    %71 = arith.truncf %70 : vector<16x128xf32> to vector<16x128xbf16>
    %72 = tpu.concatenate %71, %5 in 1 : vector<16x128xbf16>, vector<16x128xbf16> -> vector<16x256xbf16>
    %c5_61 = arith.constant 5 : index
    %c0_62 = arith.constant 0 : index
    %c0_63 = arith.constant 0 : index
    %73 = vector.load %arg2[%c5_61, %c0_62, %c0_63] : memref<10x256x128xbf16, #tpu.memory_space<vmem>>, vector<1x256x128xbf16>
    %74 = vector.shape_cast %73 : vector<1x256x128xbf16> to vector<256x128xbf16>
    %cst_64 = arith.constant dense<0.000000e+00> : vector<16x128xf32>
    %75 = tpu.matmul %72, %74, %cst_64 {dimension_numbers = #tpu.dot_dimension_numbers<[1], [0], [0], [1], [0, 0, 1, 1], [], []>} : vector<16x256xbf16>, vector<256x128xbf16>, vector<16x128xf32> -> vector<16x128xf32>
    %c5_65 = arith.constant 5 : index
    %c0_66 = arith.constant 0 : index
    %c0_67 = arith.constant 0 : index
    %76 = vector.load %arg3[%c5_65, %c0_66, %c0_67] : memref<10x1x128xf32, #tpu.memory_space<vmem>>, vector<1x1x128xf32>
    %77 = vector.shape_cast %76 : vector<1x1x128xf32> to vector<1x128xf32>
    %78 = vector.broadcast %77 : vector<1x128xf32> to vector<16x128xf32>
    %79 = arith.addf %75, %78 : vector<16x128xf32>
    %80 = arith.addf %41, %79 : vector<16x128xf32>
    %c6 = arith.constant 6 : index
    %c0_68 = arith.constant 0 : index
    %c0_69 = arith.constant 0 : index
    %81 = vector.load %arg1[%c6, %c0_68, %c0_69] : memref<7x16x16xbf16, #tpu.memory_space<vmem>>, vector<1x16x16xbf16>
    %82 = vector.shape_cast %81 : vector<1x16x16xbf16> to vector<16x16xbf16>
    %cst_70 = arith.constant dense<0.000000e+00> : vector<16x128xf32>
    %83 = tpu.matmul %82, %3, %cst_70 {dimension_numbers = #tpu.dot_dimension_numbers<[1], [0], [0], [1], [0, 0, 1, 1], [], []>} : vector<16x16xbf16>, vector<16x128xbf16>, vector<16x128xf32> -> vector<16x128xf32>
    %84 = arith.truncf %83 : vector<16x128xf32> to vector<16x128xbf16>
    %85 = tpu.concatenate %84, %3 in 1 : vector<16x128xbf16>, vector<16x128xbf16> -> vector<16x256xbf16>
    %c6_71 = arith.constant 6 : index
    %c0_72 = arith.constant 0 : index
    %c0_73 = arith.constant 0 : index
    %86 = vector.load %arg2[%c6_71, %c0_72, %c0_73] : memref<10x256x128xbf16, #tpu.memory_space<vmem>>, vector<1x256x128xbf16>
    %87 = vector.shape_cast %86 : vector<1x256x128xbf16> to vector<256x128xbf16>
    %cst_74 = arith.constant dense<0.000000e+00> : vector<16x128xf32>
    %88 = tpu.matmul %85, %87, %cst_74 {dimension_numbers = #tpu.dot_dimension_numbers<[1], [0], [0], [1], [0, 0, 1, 1], [], []>} : vector<16x256xbf16>, vector<256x128xbf16>, vector<16x128xf32> -> vector<16x128xf32>
    %c6_75 = arith.constant 6 : index
    %c0_76 = arith.constant 0 : index
    %c0_77 = arith.constant 0 : index
    %89 = vector.load %arg3[%c6_75, %c0_76, %c0_77] : memref<10x1x128xf32, #tpu.memory_space<vmem>>, vector<1x1x128xf32>
    %90 = vector.shape_cast %89 : vector<1x1x128xf32> to vector<1x128xf32>
    %91 = vector.broadcast %90 : vector<1x128xf32> to vector<16x128xf32>
    %92 = arith.addf %88, %91 : vector<16x128xf32>
    %93 = arith.addf %67, %92 : vector<16x128xf32>
    %94 = tpu.concatenate %3, %3 in 1 : vector<16x128xbf16>, vector<16x128xbf16> -> vector<16x256xbf16>
    %c7 = arith.constant 7 : index
    %c0_78 = arith.constant 0 : index
    %c0_79 = arith.constant 0 : index
    %95 = vector.load %arg2[%c7, %c0_78, %c0_79] : memref<10x256x128xbf16, #tpu.memory_space<vmem>>, vector<1x256x128xbf16>
    %96 = vector.shape_cast %95 : vector<1x256x128xbf16> to vector<256x128xbf16>
    %cst_80 = arith.constant dense<0.000000e+00> : vector<16x128xf32>
    %97 = tpu.matmul %94, %96, %cst_80 {dimension_numbers = #tpu.dot_dimension_numbers<[1], [0], [0], [1], [0, 0, 1, 1], [], []>} : vector<16x256xbf16>, vector<256x128xbf16>, vector<16x128xf32> -> vector<16x128xf32>
    %c7_81 = arith.constant 7 : index
    %c0_82 = arith.constant 0 : index
    %c0_83 = arith.constant 0 : index
    %98 = vector.load %arg3[%c7_81, %c0_82, %c0_83] : memref<10x1x128xf32, #tpu.memory_space<vmem>>, vector<1x1x128xf32>
    %99 = vector.shape_cast %98 : vector<1x1x128xf32> to vector<1x128xf32>
    %100 = vector.broadcast %99 : vector<1x128xf32> to vector<16x128xf32>
    %101 = arith.addf %97, %100 : vector<16x128xf32>
    %102 = arith.addf %93, %101 : vector<16x128xf32>
    %103 = tpu.concatenate %5, %5 in 1 : vector<16x128xbf16>, vector<16x128xbf16> -> vector<16x256xbf16>
    %c8 = arith.constant 8 : index
    %c0_84 = arith.constant 0 : index
    %c0_85 = arith.constant 0 : index
    %104 = vector.load %arg2[%c8, %c0_84, %c0_85] : memref<10x256x128xbf16, #tpu.memory_space<vmem>>, vector<1x256x128xbf16>
    %105 = vector.shape_cast %104 : vector<1x256x128xbf16> to vector<256x128xbf16>
    %cst_86 = arith.constant dense<0.000000e+00> : vector<16x128xf32>
    %106 = tpu.matmul %103, %105, %cst_86 {dimension_numbers = #tpu.dot_dimension_numbers<[1], [0], [0], [1], [0, 0, 1, 1], [], []>} : vector<16x256xbf16>, vector<256x128xbf16>, vector<16x128xf32> -> vector<16x128xf32>
    %c8_87 = arith.constant 8 : index
    %c0_88 = arith.constant 0 : index
    %c0_89 = arith.constant 0 : index
    %107 = vector.load %arg3[%c8_87, %c0_88, %c0_89] : memref<10x1x128xf32, #tpu.memory_space<vmem>>, vector<1x1x128xf32>
    %108 = vector.shape_cast %107 : vector<1x1x128xf32> to vector<1x128xf32>
    %109 = vector.broadcast %108 : vector<1x128xf32> to vector<16x128xf32>
    %110 = arith.addf %106, %109 : vector<16x128xf32>
    %111 = arith.addf %80, %110 : vector<16x128xf32>
    %112 = tpu.concatenate %1, %1 in 1 : vector<16x128xbf16>, vector<16x128xbf16> -> vector<16x256xbf16>
    %c9 = arith.constant 9 : index
    %c0_90 = arith.constant 0 : index
    %c0_91 = arith.constant 0 : index
    %113 = vector.load %arg2[%c9, %c0_90, %c0_91] : memref<10x256x128xbf16, #tpu.memory_space<vmem>>, vector<1x256x128xbf16>
    %114 = vector.shape_cast %113 : vector<1x256x128xbf16> to vector<256x128xbf16>
    %cst_92 = arith.constant dense<0.000000e+00> : vector<16x128xf32>
    %115 = tpu.matmul %112, %114, %cst_92 {dimension_numbers = #tpu.dot_dimension_numbers<[1], [0], [0], [1], [0, 0, 1, 1], [], []>} : vector<16x256xbf16>, vector<256x128xbf16>, vector<16x128xf32> -> vector<16x128xf32>
    %c9_93 = arith.constant 9 : index
    %c0_94 = arith.constant 0 : index
    %c0_95 = arith.constant 0 : index
    %116 = vector.load %arg3[%c9_93, %c0_94, %c0_95] : memref<10x1x128xf32, #tpu.memory_space<vmem>>, vector<1x1x128xf32>
    %117 = vector.shape_cast %116 : vector<1x1x128xf32> to vector<1x128xf32>
    %118 = vector.broadcast %117 : vector<1x128xf32> to vector<16x128xf32>
    %119 = arith.addf %115, %118 : vector<16x128xf32>
    %120 = arith.addf %54, %119 : vector<16x128xf32>
    %cst_96 = arith.constant 0.000000e+00 : f32
    %121 = vector.broadcast %cst_96 : f32 to vector<16x128xf32>
    %122 = arith.maximumf %120, %121 : vector<16x128xf32>
    %cst_97 = arith.constant 0.000000e+00 : f32
    %123 = vector.broadcast %cst_97 : f32 to vector<16x128xf32>
    %124 = arith.maximumf %102, %123 : vector<16x128xf32>
    %cst_98 = arith.constant 0.000000e+00 : f32
    %125 = vector.broadcast %cst_98 : f32 to vector<16x128xf32>
    %126 = arith.maximumf %111, %125 : vector<16x128xf32>
    %127 = arith.truncf %122 : vector<16x128xf32> to vector<16x128xbf16>
    %128 = arith.truncf %124 : vector<16x128xf32> to vector<16x128xbf16>
    %129 = arith.truncf %126 : vector<16x128xf32> to vector<16x128xbf16>
    %c0_99 = arith.constant 0 : index
    %c0_100 = arith.constant 0 : index
    %c0_101 = arith.constant 0 : index
    %130 = vector.load %arg1[%c0_99, %c0_100, %c0_101] : memref<7x16x16xbf16, #tpu.memory_space<vmem>>, vector<1x16x16xbf16>
    %131 = vector.shape_cast %130 : vector<1x16x16xbf16> to vector<16x16xbf16>
    %cst_102 = arith.constant dense<0.000000e+00> : vector<16x128xf32>
    %132 = tpu.matmul %131, %127, %cst_102 {dimension_numbers = #tpu.dot_dimension_numbers<[1], [0], [0], [1], [0, 0, 1, 1], [], []>} : vector<16x16xbf16>, vector<16x128xbf16>, vector<16x128xf32> -> vector<16x128xf32>
    %133 = arith.truncf %132 : vector<16x128xf32> to vector<16x128xbf16>
    %134 = tpu.concatenate %133, %128 in 1 : vector<16x128xbf16>, vector<16x128xbf16> -> vector<16x256xbf16>
    %c0_103 = arith.constant 0 : index
    %c0_104 = arith.constant 0 : index
    %c0_105 = arith.constant 0 : index
    %135 = vector.load %arg4[%c0_103, %c0_104, %c0_105] : memref<10x256x128xbf16, #tpu.memory_space<vmem>>, vector<1x256x128xbf16>
    %136 = vector.shape_cast %135 : vector<1x256x128xbf16> to vector<256x128xbf16>
    %cst_106 = arith.constant dense<0.000000e+00> : vector<16x128xf32>
    %137 = tpu.matmul %134, %136, %cst_106 {dimension_numbers = #tpu.dot_dimension_numbers<[1], [0], [0], [1], [0, 0, 1, 1], [], []>} : vector<16x256xbf16>, vector<256x128xbf16>, vector<16x128xf32> -> vector<16x128xf32>
    %c0_107 = arith.constant 0 : index
    %c0_108 = arith.constant 0 : index
    %c0_109 = arith.constant 0 : index
    %138 = vector.load %arg5[%c0_107, %c0_108, %c0_109] : memref<10x1x128xf32, #tpu.memory_space<vmem>>, vector<1x1x128xf32>
    %139 = vector.shape_cast %138 : vector<1x1x128xf32> to vector<1x128xf32>
    %140 = vector.broadcast %139 : vector<1x128xf32> to vector<16x128xf32>
    %141 = arith.addf %137, %140 : vector<16x128xf32>
    %c1_110 = arith.constant 1 : index
    %c0_111 = arith.constant 0 : index
    %c0_112 = arith.constant 0 : index
    %142 = vector.load %arg1[%c1_110, %c0_111, %c0_112] : memref<7x16x16xbf16, #tpu.memory_space<vmem>>, vector<1x16x16xbf16>
    %143 = vector.shape_cast %142 : vector<1x16x16xbf16> to vector<16x16xbf16>
    %cst_113 = arith.constant dense<0.000000e+00> : vector<16x128xf32>
    %144 = tpu.matmul %143, %128, %cst_113 {dimension_numbers = #tpu.dot_dimension_numbers<[1], [0], [0], [1], [0, 0, 1, 1], [], []>} : vector<16x16xbf16>, vector<16x128xbf16>, vector<16x128xf32> -> vector<16x128xf32>
    %145 = arith.truncf %144 : vector<16x128xf32> to vector<16x128xbf16>
    %146 = tpu.concatenate %145, %127 in 1 : vector<16x128xbf16>, vector<16x128xbf16> -> vector<16x256xbf16>
    %c1_114 = arith.constant 1 : index
    %c0_115 = arith.constant 0 : index
    %c0_116 = arith.constant 0 : index
    %147 = vector.load %arg4[%c1_114, %c0_115, %c0_116] : memref<10x256x128xbf16, #tpu.memory_space<vmem>>, vector<1x256x128xbf16>
    %148 = vector.shape_cast %147 : vector<1x256x128xbf16> to vector<256x128xbf16>
    %cst_117 = arith.constant dense<0.000000e+00> : vector<16x128xf32>
    %149 = tpu.matmul %146, %148, %cst_117 {dimension_numbers = #tpu.dot_dimension_numbers<[1], [0], [0], [1], [0, 0, 1, 1], [], []>} : vector<16x256xbf16>, vector<256x128xbf16>, vector<16x128xf32> -> vector<16x128xf32>
    %c1_118 = arith.constant 1 : index
    %c0_119 = arith.constant 0 : index
    %c0_120 = arith.constant 0 : index
    %150 = vector.load %arg5[%c1_118, %c0_119, %c0_120] : memref<10x1x128xf32, #tpu.memory_space<vmem>>, vector<1x1x128xf32>
    %151 = vector.shape_cast %150 : vector<1x1x128xf32> to vector<1x128xf32>
    %152 = vector.broadcast %151 : vector<1x128xf32> to vector<16x128xf32>
    %153 = arith.addf %149, %152 : vector<16x128xf32>
    %c2_121 = arith.constant 2 : index
    %c0_122 = arith.constant 0 : index
    %c0_123 = arith.constant 0 : index
    %154 = vector.load %arg1[%c2_121, %c0_122, %c0_123] : memref<7x16x16xbf16, #tpu.memory_space<vmem>>, vector<1x16x16xbf16>
    %155 = vector.shape_cast %154 : vector<1x16x16xbf16> to vector<16x16xbf16>
    %cst_124 = arith.constant dense<0.000000e+00> : vector<16x128xf32>
    %156 = tpu.matmul %155, %127, %cst_124 {dimension_numbers = #tpu.dot_dimension_numbers<[1], [0], [0], [1], [0, 0, 1, 1], [], []>} : vector<16x16xbf16>, vector<16x128xbf16>, vector<16x128xf32> -> vector<16x128xf32>
    %157 = arith.truncf %156 : vector<16x128xf32> to vector<16x128xbf16>
    %158 = tpu.concatenate %157, %129 in 1 : vector<16x128xbf16>, vector<16x128xbf16> -> vector<16x256xbf16>
    %c2_125 = arith.constant 2 : index
    %c0_126 = arith.constant 0 : index
    %c0_127 = arith.constant 0 : index
    %159 = vector.load %arg4[%c2_125, %c0_126, %c0_127] : memref<10x256x128xbf16, #tpu.memory_space<vmem>>, vector<1x256x128xbf16>
    %160 = vector.shape_cast %159 : vector<1x256x128xbf16> to vector<256x128xbf16>
    %cst_128 = arith.constant dense<0.000000e+00> : vector<16x128xf32>
    %161 = tpu.matmul %158, %160, %cst_128 {dimension_numbers = #tpu.dot_dimension_numbers<[1], [0], [0], [1], [0, 0, 1, 1], [], []>} : vector<16x256xbf16>, vector<256x128xbf16>, vector<16x128xf32> -> vector<16x128xf32>
    %c2_129 = arith.constant 2 : index
    %c0_130 = arith.constant 0 : index
    %c0_131 = arith.constant 0 : index
    %162 = vector.load %arg5[%c2_129, %c0_130, %c0_131] : memref<10x1x128xf32, #tpu.memory_space<vmem>>, vector<1x1x128xf32>
    %163 = vector.shape_cast %162 : vector<1x1x128xf32> to vector<1x128xf32>
    %164 = vector.broadcast %163 : vector<1x128xf32> to vector<16x128xf32>
    %165 = arith.addf %161, %164 : vector<16x128xf32>
    %c3_132 = arith.constant 3 : index
    %c0_133 = arith.constant 0 : index
    %c0_134 = arith.constant 0 : index
    %166 = vector.load %arg1[%c3_132, %c0_133, %c0_134] : memref<7x16x16xbf16, #tpu.memory_space<vmem>>, vector<1x16x16xbf16>
    %167 = vector.shape_cast %166 : vector<1x16x16xbf16> to vector<16x16xbf16>
    %cst_135 = arith.constant dense<0.000000e+00> : vector<16x128xf32>
    %168 = tpu.matmul %167, %129, %cst_135 {dimension_numbers = #tpu.dot_dimension_numbers<[1], [0], [0], [1], [0, 0, 1, 1], [], []>} : vector<16x16xbf16>, vector<16x128xbf16>, vector<16x128xf32> -> vector<16x128xf32>
    %169 = arith.truncf %168 : vector<16x128xf32> to vector<16x128xbf16>
    %170 = tpu.concatenate %169, %127 in 1 : vector<16x128xbf16>, vector<16x128xbf16> -> vector<16x256xbf16>
    %c3_136 = arith.constant 3 : index
    %c0_137 = arith.constant 0 : index
    %c0_138 = arith.constant 0 : index
    %171 = vector.load %arg4[%c3_136, %c0_137, %c0_138] : memref<10x256x128xbf16, #tpu.memory_space<vmem>>, vector<1x256x128xbf16>
    %172 = vector.shape_cast %171 : vector<1x256x128xbf16> to vector<256x128xbf16>
    %cst_139 = arith.constant dense<0.000000e+00> : vector<16x128xf32>
    %173 = tpu.matmul %170, %172, %cst_139 {dimension_numbers = #tpu.dot_dimension_numbers<[1], [0], [0], [1], [0, 0, 1, 1], [], []>} : vector<16x256xbf16>, vector<256x128xbf16>, vector<16x128xf32> -> vector<16x128xf32>
    %c3_140 = arith.constant 3 : index
    %c0_141 = arith.constant 0 : index
    %c0_142 = arith.constant 0 : index
    %174 = vector.load %arg5[%c3_140, %c0_141, %c0_142] : memref<10x1x128xf32, #tpu.memory_space<vmem>>, vector<1x1x128xf32>
    %175 = vector.shape_cast %174 : vector<1x1x128xf32> to vector<1x128xf32>
    %176 = vector.broadcast %175 : vector<1x128xf32> to vector<16x128xf32>
    %177 = arith.addf %173, %176 : vector<16x128xf32>
    %178 = arith.addf %153, %177 : vector<16x128xf32>
    %c4_143 = arith.constant 4 : index
    %c0_144 = arith.constant 0 : index
    %c0_145 = arith.constant 0 : index
    %179 = vector.load %arg1[%c4_143, %c0_144, %c0_145] : memref<7x16x16xbf16, #tpu.memory_space<vmem>>, vector<1x16x16xbf16>
    %180 = vector.shape_cast %179 : vector<1x16x16xbf16> to vector<16x16xbf16>
    %cst_146 = arith.constant dense<0.000000e+00> : vector<16x128xf32>
    %181 = tpu.matmul %180, %129, %cst_146 {dimension_numbers = #tpu.dot_dimension_numbers<[1], [0], [0], [1], [0, 0, 1, 1], [], []>} : vector<16x16xbf16>, vector<16x128xbf16>, vector<16x128xf32> -> vector<16x128xf32>
    %182 = arith.truncf %181 : vector<16x128xf32> to vector<16x128xbf16>
    %183 = tpu.concatenate %182, %128 in 1 : vector<16x128xbf16>, vector<16x128xbf16> -> vector<16x256xbf16>
    %c4_147 = arith.constant 4 : index
    %c0_148 = arith.constant 0 : index
    %c0_149 = arith.constant 0 : index
    %184 = vector.load %arg4[%c4_147, %c0_148, %c0_149] : memref<10x256x128xbf16, #tpu.memory_space<vmem>>, vector<1x256x128xbf16>
    %185 = vector.shape_cast %184 : vector<1x256x128xbf16> to vector<256x128xbf16>
    %cst_150 = arith.constant dense<0.000000e+00> : vector<16x128xf32>
    %186 = tpu.matmul %183, %185, %cst_150 {dimension_numbers = #tpu.dot_dimension_numbers<[1], [0], [0], [1], [0, 0, 1, 1], [], []>} : vector<16x256xbf16>, vector<256x128xbf16>, vector<16x128xf32> -> vector<16x128xf32>
    %c4_151 = arith.constant 4 : index
    %c0_152 = arith.constant 0 : index
    %c0_153 = arith.constant 0 : index
    %187 = vector.load %arg5[%c4_151, %c0_152, %c0_153] : memref<10x1x128xf32, #tpu.memory_space<vmem>>, vector<1x1x128xf32>
    %188 = vector.shape_cast %187 : vector<1x1x128xf32> to vector<1x128xf32>
    %189 = vector.broadcast %188 : vector<1x128xf32> to vector<16x128xf32>
    %190 = arith.addf %186, %189 : vector<16x128xf32>
    %191 = arith.addf %141, %190 : vector<16x128xf32>
    %c5_154 = arith.constant 5 : index
    %c0_155 = arith.constant 0 : index
    %c0_156 = arith.constant 0 : index
    %192 = vector.load %arg1[%c5_154, %c0_155, %c0_156] : memref<7x16x16xbf16, #tpu.memory_space<vmem>>, vector<1x16x16xbf16>
    %193 = vector.shape_cast %192 : vector<1x16x16xbf16> to vector<16x16xbf16>
    %cst_157 = arith.constant dense<0.000000e+00> : vector<16x128xf32>
    %194 = tpu.matmul %193, %128, %cst_157 {dimension_numbers = #tpu.dot_dimension_numbers<[1], [0], [0], [1], [0, 0, 1, 1], [], []>} : vector<16x16xbf16>, vector<16x128xbf16>, vector<16x128xf32> -> vector<16x128xf32>
    %195 = arith.truncf %194 : vector<16x128xf32> to vector<16x128xbf16>
    %196 = tpu.concatenate %195, %129 in 1 : vector<16x128xbf16>, vector<16x128xbf16> -> vector<16x256xbf16>
    %c5_158 = arith.constant 5 : index
    %c0_159 = arith.constant 0 : index
    %c0_160 = arith.constant 0 : index
    %197 = vector.load %arg4[%c5_158, %c0_159, %c0_160] : memref<10x256x128xbf16, #tpu.memory_space<vmem>>, vector<1x256x128xbf16>
    %198 = vector.shape_cast %197 : vector<1x256x128xbf16> to vector<256x128xbf16>
    %cst_161 = arith.constant dense<0.000000e+00> : vector<16x128xf32>
    %199 = tpu.matmul %196, %198, %cst_161 {dimension_numbers = #tpu.dot_dimension_numbers<[1], [0], [0], [1], [0, 0, 1, 1], [], []>} : vector<16x256xbf16>, vector<256x128xbf16>, vector<16x128xf32> -> vector<16x128xf32>
    %c5_162 = arith.constant 5 : index
    %c0_163 = arith.constant 0 : index
    %c0_164 = arith.constant 0 : index
    %200 = vector.load %arg5[%c5_162, %c0_163, %c0_164] : memref<10x1x128xf32, #tpu.memory_space<vmem>>, vector<1x1x128xf32>
    %201 = vector.shape_cast %200 : vector<1x1x128xf32> to vector<1x128xf32>
    %202 = vector.broadcast %201 : vector<1x128xf32> to vector<16x128xf32>
    %203 = arith.addf %199, %202 : vector<16x128xf32>
    %204 = arith.addf %165, %203 : vector<16x128xf32>
    %c6_165 = arith.constant 6 : index
    %c0_166 = arith.constant 0 : index
    %c0_167 = arith.constant 0 : index
    %205 = vector.load %arg1[%c6_165, %c0_166, %c0_167] : memref<7x16x16xbf16, #tpu.memory_space<vmem>>, vector<1x16x16xbf16>
    %206 = vector.shape_cast %205 : vector<1x16x16xbf16> to vector<16x16xbf16>
    %cst_168 = arith.constant dense<0.000000e+00> : vector<16x128xf32>
    %207 = tpu.matmul %206, %128, %cst_168 {dimension_numbers = #tpu.dot_dimension_numbers<[1], [0], [0], [1], [0, 0, 1, 1], [], []>} : vector<16x16xbf16>, vector<16x128xbf16>, vector<16x128xf32> -> vector<16x128xf32>
    %208 = arith.truncf %207 : vector<16x128xf32> to vector<16x128xbf16>
    %209 = tpu.concatenate %208, %128 in 1 : vector<16x128xbf16>, vector<16x128xbf16> -> vector<16x256xbf16>
    %c6_169 = arith.constant 6 : index
    %c0_170 = arith.constant 0 : index
    %c0_171 = arith.constant 0 : index
    %210 = vector.load %arg4[%c6_169, %c0_170, %c0_171] : memref<10x256x128xbf16, #tpu.memory_space<vmem>>, vector<1x256x128xbf16>
    %211 = vector.shape_cast %210 : vector<1x256x128xbf16> to vector<256x128xbf16>
    %cst_172 = arith.constant dense<0.000000e+00> : vector<16x128xf32>
    %212 = tpu.matmul %209, %211, %cst_172 {dimension_numbers = #tpu.dot_dimension_numbers<[1], [0], [0], [1], [0, 0, 1, 1], [], []>} : vector<16x256xbf16>, vector<256x128xbf16>, vector<16x128xf32> -> vector<16x128xf32>
    %c6_173 = arith.constant 6 : index
    %c0_174 = arith.constant 0 : index
    %c0_175 = arith.constant 0 : index
    %213 = vector.load %arg5[%c6_173, %c0_174, %c0_175] : memref<10x1x128xf32, #tpu.memory_space<vmem>>, vector<1x1x128xf32>
    %214 = vector.shape_cast %213 : vector<1x1x128xf32> to vector<1x128xf32>
    %215 = vector.broadcast %214 : vector<1x128xf32> to vector<16x128xf32>
    %216 = arith.addf %212, %215 : vector<16x128xf32>
    %217 = arith.addf %191, %216 : vector<16x128xf32>
    %218 = tpu.concatenate %128, %128 in 1 : vector<16x128xbf16>, vector<16x128xbf16> -> vector<16x256xbf16>
    %c7_176 = arith.constant 7 : index
    %c0_177 = arith.constant 0 : index
    %c0_178 = arith.constant 0 : index
    %219 = vector.load %arg4[%c7_176, %c0_177, %c0_178] : memref<10x256x128xbf16, #tpu.memory_space<vmem>>, vector<1x256x128xbf16>
    %220 = vector.shape_cast %219 : vector<1x256x128xbf16> to vector<256x128xbf16>
    %cst_179 = arith.constant dense<0.000000e+00> : vector<16x128xf32>
    %221 = tpu.matmul %218, %220, %cst_179 {dimension_numbers = #tpu.dot_dimension_numbers<[1], [0], [0], [1], [0, 0, 1, 1], [], []>} : vector<16x256xbf16>, vector<256x128xbf16>, vector<16x128xf32> -> vector<16x128xf32>
    %c7_180 = arith.constant 7 : index
    %c0_181 = arith.constant 0 : index
    %c0_182 = arith.constant 0 : index
    %222 = vector.load %arg5[%c7_180, %c0_181, %c0_182] : memref<10x1x128xf32, #tpu.memory_space<vmem>>, vector<1x1x128xf32>
    %223 = vector.shape_cast %222 : vector<1x1x128xf32> to vector<1x128xf32>
    %224 = vector.broadcast %223 : vector<1x128xf32> to vector<16x128xf32>
    %225 = arith.addf %221, %224 : vector<16x128xf32>
    %226 = arith.addf %217, %225 : vector<16x128xf32>
    %227 = tpu.concatenate %129, %129 in 1 : vector<16x128xbf16>, vector<16x128xbf16> -> vector<16x256xbf16>
    %c8_183 = arith.constant 8 : index
    %c0_184 = arith.constant 0 : index
    %c0_185 = arith.constant 0 : index
    %228 = vector.load %arg4[%c8_183, %c0_184, %c0_185] : memref<10x256x128xbf16, #tpu.memory_space<vmem>>, vector<1x256x128xbf16>
    %229 = vector.shape_cast %228 : vector<1x256x128xbf16> to vector<256x128xbf16>
    %cst_186 = arith.constant dense<0.000000e+00> : vector<16x128xf32>
    %230 = tpu.matmul %227, %229, %cst_186 {dimension_numbers = #tpu.dot_dimension_numbers<[1], [0], [0], [1], [0, 0, 1, 1], [], []>} : vector<16x256xbf16>, vector<256x128xbf16>, vector<16x128xf32> -> vector<16x128xf32>
    %c8_187 = arith.constant 8 : index
    %c0_188 = arith.constant 0 : index
    %c0_189 = arith.constant 0 : index
    %231 = vector.load %arg5[%c8_187, %c0_188, %c0_189] : memref<10x1x128xf32, #tpu.memory_space<vmem>>, vector<1x1x128xf32>
    %232 = vector.shape_cast %231 : vector<1x1x128xf32> to vector<1x128xf32>
    %233 = vector.broadcast %232 : vector<1x128xf32> to vector<16x128xf32>
    %234 = arith.addf %230, %233 : vector<16x128xf32>
    %235 = arith.addf %204, %234 : vector<16x128xf32>
    %236 = tpu.concatenate %127, %127 in 1 : vector<16x128xbf16>, vector<16x128xbf16> -> vector<16x256xbf16>
    %c9_190 = arith.constant 9 : index
    %c0_191 = arith.constant 0 : index
    %c0_192 = arith.constant 0 : index
    %237 = vector.load %arg4[%c9_190, %c0_191, %c0_192] : memref<10x256x128xbf16, #tpu.memory_space<vmem>>, vector<1x256x128xbf16>
    %238 = vector.shape_cast %237 : vector<1x256x128xbf16> to vector<256x128xbf16>
    %cst_193 = arith.constant dense<0.000000e+00> : vector<16x128xf32>
    %239 = tpu.matmul %236, %238, %cst_193 {dimension_numbers = #tpu.dot_dimension_numbers<[1], [0], [0], [1], [0, 0, 1, 1], [], []>} : vector<16x256xbf16>, vector<256x128xbf16>, vector<16x128xf32> -> vector<16x128xf32>
    %c9_194 = arith.constant 9 : index
    %c0_195 = arith.constant 0 : index
    %c0_196 = arith.constant 0 : index
    %240 = vector.load %arg5[%c9_194, %c0_195, %c0_196] : memref<10x1x128xf32, #tpu.memory_space<vmem>>, vector<1x1x128xf32>
    %241 = vector.shape_cast %240 : vector<1x1x128xf32> to vector<1x128xf32>
    %242 = vector.broadcast %241 : vector<1x128xf32> to vector<16x128xf32>
    %243 = arith.addf %239, %242 : vector<16x128xf32>
    %244 = arith.addf %178, %243 : vector<16x128xf32>
    %cst_197 = arith.constant 0.000000e+00 : f32
    %245 = vector.broadcast %cst_197 : f32 to vector<16x128xf32>
    %246 = arith.maximumf %244, %245 : vector<16x128xf32>
    %cst_198 = arith.constant 0.000000e+00 : f32
    %247 = vector.broadcast %cst_198 : f32 to vector<16x128xf32>
    %248 = arith.maximumf %226, %247 : vector<16x128xf32>
    %cst_199 = arith.constant 0.000000e+00 : f32
    %249 = vector.broadcast %cst_199 : f32 to vector<16x128xf32>
    %250 = arith.maximumf %235, %249 : vector<16x128xf32>
    %c0_200 = arith.constant 0 : index
    %c0_201 = arith.constant 0 : index
    %251 = vector.load %arg8[%c0_200, %c0_201] : memref<16x128xf32, #tpu.memory_space<vmem>>, vector<16x128xf32>
    tpu.vector_store %arg8[%c0_200, %c0_201], %246 {strides = array<i32>} : memref<16x128xf32, #tpu.memory_space<vmem>>, vector<16x128xf32>,
    %252 = arith.truncf %248 : vector<16x128xf32> to vector<16x128xbf16>
    %c0_202 = arith.constant 0 : index
    %c0_203 = arith.constant 0 : index
    %c0_204 = arith.constant 0 : index
    %253 = vector.load %arg6[%c0_202, %c0_203, %c0_204] : memref<2x128x128xbf16, #tpu.memory_space<vmem>>, vector<1x128x128xbf16>
    %254 = vector.shape_cast %253 : vector<1x128x128xbf16> to vector<128x128xbf16>
    %cst_205 = arith.constant dense<0.000000e+00> : vector<16x128xf32>
    %255 = tpu.matmul %252, %254, %cst_205 {dimension_numbers = #tpu.dot_dimension_numbers<[1], [0], [0], [1], [0, 0, 1, 1], [], []>} : vector<16x128xbf16>, vector<128x128xbf16>, vector<16x128xf32> -> vector<16x128xf32>
    %c0_206 = arith.constant 0 : index
    %c0_207 = arith.constant 0 : index
    %c0_208 = arith.constant 0 : index
    %256 = vector.load %arg7[%c0_206, %c0_207, %c0_208] : memref<2x1x128xf32, #tpu.memory_space<vmem>>, vector<1x1x128xf32>
    %257 = vector.shape_cast %256 : vector<1x1x128xf32> to vector<1x128xf32>
    %258 = vector.broadcast %257 : vector<1x128xf32> to vector<16x128xf32>
    %259 = arith.addf %255, %258 : vector<16x128xf32>
    %c0_209 = arith.constant 0 : index
    %c0_210 = arith.constant 0 : index
    %260 = vector.load %arg9[%c0_209, %c0_210] : memref<16x128xf32, #tpu.memory_space<vmem>>, vector<16x128xf32>
    tpu.vector_store %arg9[%c0_209, %c0_210], %259 {strides = array<i32>} : memref<16x128xf32, #tpu.memory_space<vmem>>, vector<16x128xf32>,
    %261 = arith.truncf %250 : vector<16x128xf32> to vector<16x128xbf16>
    %c1_211 = arith.constant 1 : index
    %c0_212 = arith.constant 0 : index
    %c0_213 = arith.constant 0 : index
    %262 = vector.load %arg6[%c1_211, %c0_212, %c0_213] : memref<2x128x128xbf16, #tpu.memory_space<vmem>>, vector<1x128x128xbf16>
    %263 = vector.shape_cast %262 : vector<1x128x128xbf16> to vector<128x128xbf16>
    %cst_214 = arith.constant dense<0.000000e+00> : vector<16x128xf32>
    %264 = tpu.matmul %261, %263, %cst_214 {dimension_numbers = #tpu.dot_dimension_numbers<[1], [0], [0], [1], [0, 0, 1, 1], [], []>} : vector<16x128xbf16>, vector<128x128xbf16>, vector<16x128xf32> -> vector<16x128xf32>
    %c1_215 = arith.constant 1 : index
    %c0_216 = arith.constant 0 : index
    %c0_217 = arith.constant 0 : index
    %265 = vector.load %arg7[%c1_215, %c0_216, %c0_217] : memref<2x1x128xf32, #tpu.memory_space<vmem>>, vector<1x1x128xf32>
    %266 = vector.shape_cast %265 : vector<1x1x128xf32> to vector<1x128xf32>
    %267 = vector.broadcast %266 : vector<1x128xf32> to vector<16x128xf32>
    %268 = arith.addf %264, %267 : vector<16x128xf32>
    %c0_218 = arith.constant 0 : index
    %c0_219 = arith.constant 0 : index
    %269 = vector.load %arg10[%c0_218, %c0_219] : memref<16x128xf32, #tpu.memory_space<vmem>>, vector<16x128xf32>
    tpu.vector_store %arg10[%c0_218, %c0_219], %268 {strides = array<i32>} : memref<16x128xf32, #tpu.memory_space<vmem>>, vector<16x128xf32>,
    return
  }
}

</mosaic_0001>

<bundles_post_ra>
// kernel: tpu_custom_call.1
= control target key start
LH: loop header
LB: loop body
LE: loop exit
PB: predicated region body
PF: predicated region fallthrough
CT: control target
= control target key end

     0   :  { %16 = vsyncpa [#allocation3], 0  ;;  %s6435_s0 = inlined_call_operand.hbm [shape: bf16[3,16,128], index: 0, kind: input, shape index: {}]   ;;  %s6436_s1 = inlined_call_operand.hbm [shape: bf16[7,16,16], index: 1, kind: input, shape index: {}]   ;;  %s6437_s2 = inlined_call_operand.hbm [shape: bf16[10,256,128], index: 2, kind: input, shape index: {}]   ;;  %s6438_s3 = inlined_call_operand.hbm [shape: f32[10,1,128], index: 3, kind: input, shape index: {}]   ;;  %s6439_s4 = inlined_call_operand.hbm [shape: bf16[10,256,128], index: 4, kind: input, shape index: {}]   ;;  %s6440_s5 = inlined_call_operand.hbm [shape: f32[10,1,128], index: 5, kind: input, shape index: {}]   ;;  %s6441_s6 = inlined_call_operand.hbm [shape: bf16[2,128,128], index: 6, kind: input, shape index: {}]   ;;  %s6442_s7 = inlined_call_operand.vmem [shape: f32[2,1,128], index: 7, kind: input, shape index: {}]   ;;  %s6443_s8 = inlined_call_operand.hbm [shape: f32[16,128], index: 8, kind: output, shape index: {0}]   ;;  %s6444_s9 = inlined_call_operand.hbm [shape: f32[16,128], index: 9, kind: output, shape index: {1}]   ;;  %s6445_s10 = inlined_call_operand.hbm [shape: f32[16,128], index: 10, kind: output, shape index: {2}]  }
   0x1   :  { %17 = vsyncpa [#allocation6], 0 }
   0x2   :  { %18 = vsyncpa [#allocation9], 0 }
   0x3   :  { %19 = vsyncpa [#allocation12], 0 }
   0x4   :  { %20 = vsyncpa [#allocation4], 0 }
   0x5   :  { %21 = vsyncpa [#allocation16], 0  ;;  %s39_s15 = sshll.u32 %s6436_s1, 4  ;;  %s6128_s16 = smov [#allocation5]   ;;  %s40_s15 = int_to_ptr.hbm [resolvable:$true] %s39_s15 }
   0x6   :  { %s41_s17 = sshll.u32 %s6128_s16, 4  ;;  %s65_s20 = sshll.u32 %s6438_s3, 4  ;;  %s42_s17 = int_to_ptr.vmem [resolvable:$true] %s41_s17  ;;  %s66_s20 = int_to_ptr.hbm [resolvable:$true] %s65_s20 }
   0x7   :  { %s6129_s21 = smov 64   ;;  %s6130_s22 = smov 4  }
   0x8   :  { %47 = dma.hbm_to_vmem [thread:$0]  %s40_s15, 896, %s42_s17, [#allocation6], %s6129_s21, %s6129_s21, %s6130_s22  }
   0x9   :  { %s6131_s23 = smov [#allocation8]   ;;  %s6132_s25 = smov 16  }
   0xa   :  { %s67_s24 = sshll.u32 %s6131_s23, 4  ;;  %s6133_s1 = smov 1   ;;  %s68_s24 = int_to_ptr.vmem [resolvable:$true] %s67_s24 }
   0xb   :  { %73 = dma.hbm_to_vmem [thread:$0]  %s66_s20, 160, %s68_s24, [#allocation9], %s6132_s25, %s6132_s25, %s6133_s1  }
   0xc   :  { %s91_s28 = sshll.u32 %s6440_s5, 4  ;;  %s6134_s29 = smov [#allocation11]   ;;  %s92_s28 = int_to_ptr.hbm [resolvable:$true] %s91_s28 }
   0xd   :  { %s93_s3 = sshll.u32 %s6134_s29, 4  ;;  %s26_s12 = sshll.u32 %s6435_s0, 4  ;;  %s94_s3 = int_to_ptr.vmem [resolvable:$true] %s93_s3  ;;  %s27_s12 = int_to_ptr.hbm [resolvable:$true] %s26_s12 }
   0xe   :  { %99 = dma.hbm_to_vmem [thread:$0]  %s92_s28, 160, %s94_s3, [#allocation12], %s6132_s25, %s6132_s25, %s6133_s1  }
   0xf   :  { %s6135_s13 = smov [#allocation2]   ;;  %s52_s17 = sshll.u32 %s6437_s2, 4  ;;  %s53_s17 = int_to_ptr.hbm [resolvable:$true] %s52_s17 }
  0x10   :  { %s28_s14 = sshll.u32 %s6135_s13, 4  ;;  %s78_s19 = sshll.u32 %s6439_s4, 4  ;;  %s29_s14 = int_to_ptr.vmem [resolvable:$true] %s28_s14  ;;  %s79_s19 = int_to_ptr.hbm [resolvable:$true] %s78_s19 }
  0x11   :  { %34 = dma.hbm_to_vmem [thread:$0]  %s27_s12, 384, %s29_s14, [#allocation3], %s6129_s21, %s6129_s21, %s6130_s22  }
  0x12   :  { %s6136_s20 = smov [#allocation7]   ;;  %s6137_s23 = smov [#allocation10]  }
  0x13   :  { %s54_s0 = sshll.u32 %s6136_s20, 4  ;;  %s80_s2 = sshll.u32 %s6137_s23, 4  ;;  %s55_s0 = int_to_ptr.vmem [resolvable:$true] %s54_s0  ;;  %s81_s2 = int_to_ptr.vmem [resolvable:$true] %s80_s2 }
  0x14   :  { %60 = dma.hbm_to_vmem [thread:$0]  %s53_s17, 20480, %s55_s0, [#allocation6], %s6129_s21, %s6129_s21, %s6130_s22  }
  0x15   :  { %s104_s1 = sshll.u32 %s6441_s6, 4  ;;  %s6138_s4 = smov [#allocation13]   ;;  %s105_s1 = int_to_ptr.hbm [resolvable:$true] %s104_s1 }
  0x16   :  { %86 = dma.hbm_to_vmem [thread:$0]  %s79_s19, 20480, %s81_s2, [#allocation9], %s6129_s21, %s6129_s21, %s6130_s22  }
  0x17   :  { %s106_s26 = sshll.u32 %s6138_s4, 4  ;;  %s107_s26 = int_to_ptr.vmem [resolvable:$true] %s106_s26 }
  0x18   :  { %112 = dma.hbm_to_vmem [thread:$0]  %s105_s1, 2048, %s107_s26, [#allocation12], %s6129_s21, %s6129_s21, %s6130_s22  }
  0x19   :  { %6116 = dma.done.wait [#allocation3], 384  }
  0x1a   :  { %6117 = vsyncadd [#allocation3], 4294966912 }
  0x1b   :  { %6118 = dma.done.wait [#allocation6], 21376  }
  0x1c   :  { %6119 = vsyncadd [#allocation6], 4294945920 }
  0x1d   :  { %6120 = dma.done.wait [#allocation9], 20640  }
  0x1e   :  { %6121 = vsyncadd [#allocation9], 4294946656 }
  0x1f   :  { %6122 = dma.done.wait [#allocation12], 2208  }
  0x20   :  { %6123 = vsyncadd [#allocation12], 4294965088  ;;  %v6235_v0 = vld [vmem:[#allocation2] sm:$0xff]  ;;  %v6237_v1 = vld [vmem:[#allocation2 + $0x8] sm:$0xff]  ;;  %vm165_vm0 = vcmask 130048   ;;  %s4035_s22 = sshll.u32 %s6443_s8, 4  ;;  %s4036_s22 = int_to_ptr.hbm [resolvable:$true] %s4035_s22 }
  0x21   :  { %v5488_v2 = vld [vmem:[#allocation5] sm:$0xff]  ;;  %v5505_v3 = vld [vmem:[#allocation5 + $0x8] sm:$0xff]  ;;  %v5521_v4 = vld [vmem:[#allocation7 + $0xf8] sm:$0xff]  ;;  %176 = vmatpush.bf16.msra.mxu0 %v6235_v0  ;;  %375 = vmatpush.bf16.msra.mxu3 %v6237_v1  ;;  %s6139_s27 = smov [#allocation14]   ;;  %s6140_s29 = smov 128  }
  0x22   :  { %v5513_v5 = vld [vmem:[#allocation7 + $0xb8] sm:$0xff]  ;;  %v5520_v6 = vld [vmem:[#allocation7 + $0xf0] sm:$0xff]  ;;  %v5519_v12 = vld [vmem:[#allocation7 + $0xe8] sm:$0xff]  ;;  %s4033_s28 = sshll.u32 %s6139_s27, 4  ;;  %s6141_s3 = smov 8   ;;  %s4034_s28 = int_to_ptr.vmem [resolvable:$true] %s4033_s28 }
  0x23   :  { %v5504_v7 = vld [vmem:[#allocation7 + $0x78] sm:$0xff]  ;;  %v5512_v8 = vld [vmem:[#allocation7 + $0xb0] sm:$0xff]  ;;  %v5511_v13 = vld [vmem:[#allocation7 + $0xa8] sm:$0xff]  ;;  %s6142_s12 = smov [#allocation15]   ;;  %s4048_s15 = sshll.u32 %s6444_s9, 4  ;;  %s4049_s15 = int_to_ptr.hbm [resolvable:$true] %s4048_s15 }
  0x24   :  { %v5496_v9 = vld [vmem:[#allocation7 + $0x38] sm:$0xff]  ;;  %4094 = vmatmul.msk.bf16.vlgmr.msra.gmra.mxu0 %vm165_vm0, %v5488_v2  ;;  %4167 = vmatmul.msk.bf16.vlgmr.msra.gmra.mxu3 %vm165_vm0, %v5505_v3  ;;  %v5503_v10 = vld [vmem:[#allocation7 + $0x70] sm:$0xff]  ;;  %v5502_v14 = vld [vmem:[#allocation7 + $0x68] sm:$0xff]  ;;  %s4046_s13 = sshll.u32 %s6142_s12, 4  ;;  %s6143_s5 = smov [#allocation17]   ;;  %s4047_s13 = int_to_ptr.vmem [resolvable:$true] %s4046_s13 }
  0x25   :  { %538 = vmatpush.bf16.msrb.mxu3 %v5521_v4  ;;  %524 = vmatpush.bf16.msrb.mxu0 %v5513_v5  ;;  %v5495_v11 = vld [vmem:[#allocation7 + $0x30] sm:$0xff]  ;;  %v5494_v15 = vld [vmem:[#allocation7 + $0x28] sm:$0xff]  ;;  %v5518_v16 = vld [vmem:[#allocation7 + $0xe0] sm:$0xff]  ;;  %s4059_s18 = sshll.u32 %s6143_s5, 4  ;;  %s4061_s20 = sshll.u32 %s6445_s10, 4  ;;  %s4060_s18 = int_to_ptr.vmem [resolvable:$true] %s4059_s18  ;;  %s4062_s20 = int_to_ptr.hbm [resolvable:$true] %s4061_s20 }
  0x26   :  { %343 = vmatpush.bf16.msra.mxu2 %v5504_v7  ;;  %329 = vmatpush.bf16.msra.mxu1 %v5496_v9  ;;  %v5510_v17 = vld [vmem:[#allocation7 + $0xa0] sm:$0xff]  ;;  %v5517_v20 = vld [vmem:[#allocation7 + $0xd8] sm:$0xff]  ;;  %v5516_v23 = vld [vmem:[#allocation7 + $0xd0] sm:$0xff] }
  0x27   :  { %v5501_v18 = vld [vmem:[#allocation7 + $0x60] sm:$0xff]  ;;  %v5509_v21 = vld [vmem:[#allocation7 + $0x98] sm:$0xff]  ;;  %v5508_v24 = vld [vmem:[#allocation7 + $0x90] sm:$0xff] }
  0x28   :  { %v5493_v19 = vld [vmem:[#allocation7 + $0x20] sm:$0xff]  ;;  %v5500_v22 = vld [vmem:[#allocation7 + $0x58] sm:$0xff]  ;;  %v5515_v25 = vld [vmem:[#allocation7 + $0xc8] sm:$0xff] }
  0x29   :  { %539 = vmatpush.bf16.msrb.mxu3 %v5520_v6  ;;  %525 = vmatpush.bf16.msrb.mxu0 %v5512_v8  ;;  %v5514_v26 = vld [vmem:[#allocation7 + $0xc0] sm:$0xff]  ;;  %v5492_v28 = vld [vmem:[#allocation7 + $0x18] sm:$0xff]  ;;  %v5499_v29 = vld [vmem:[#allocation7 + $0x50] sm:$0xff] }
  0x2a   :  { %344 = vmatpush.bf16.msra.mxu2 %v5503_v10  ;;  %330 = vmatpush.bf16.msra.mxu1 %v5495_v11  ;;  %v6244_v27 = vld [vmem:[#allocation2 + $0x10] sm:$0xff]  ;;  %v5507_v31 = vld [vmem:[#allocation7 + $0x88] sm:$0xff]  ;;  %v5491_v32 = vld [vmem:[#allocation7 + $0x10] sm:$0xff] }
  0x2b   :  { %v5539_v30 = vld [vmem:[#allocation5 + $0x18] sm:$0xff]  ;;  %v5498_v33 = vld [vmem:[#allocation7 + $0x48] sm:$0xff]  ;;  %v5538_v35 = vld [vmem:[#allocation7 + $0x178] sm:$0xff] }
  0x2c   :  { %v5506_v34 = vld [vmem:[#allocation7 + $0x80] sm:$0xff]  ;;  %v5490_v36 = vld [vmem:[#allocation7 + $0x8] sm:$0xff]  ;;  %v5537_v38 = vld [vmem:[#allocation7 + $0x170] sm:$0xff] }
  0x2d   :  { %540 = vmatpush.bf16.msrb.mxu3 %v5519_v12  ;;  %526 = vmatpush.bf16.msrb.mxu0 %v5511_v13  ;;  %v5497_v37 = vld [vmem:[#allocation7 + $0x40] sm:$0xff]  ;;  %v5536_v40 = vld [vmem:[#allocation7 + $0x168] sm:$0xff]  ;;  %v5534_v42 = vld [vmem:[#allocation7 + $0x158] sm:$0xff] }
  0x2e   :  { %345 = vmatpush.bf16.msra.mxu2 %v5502_v14  ;;  %331 = vmatpush.bf16.msra.mxu1 %v5494_v15  ;;  %v5489_v39 = vld [vmem:[#allocation7] sm:$0xff]  ;;  %v5533_v43 = vld [vmem:[#allocation7 + $0x150] sm:$0xff]  ;;  %v5532_v44 = vld [vmem:[#allocation7 + $0x148] sm:$0xff] }
  0x2f   :  { %v5535_v41 = vld [vmem:[#allocation7 + $0x160] sm:$0xff]  ;;  %v5555_v60 = vld [vmem:[#allocation7 + $0x1f8] sm:$0xff]  ;;  %v5554_v62 = vld [vmem:[#allocation7 + $0x1f0] sm:$0xff] }
  0x30   :  { %v5531_v45 = vld [vmem:[#allocation7 + $0x140] sm:$0xff]  ;;  %v5547_v61 = vld [vmem:[#allocation7 + $0x1b8] sm:$0xff]  ;;  %v5546_v63 = vld [vmem:[#allocation7 + $0x1b0] sm:$0xff] }
  0x31   :  { %541 = vmatpush.bf16.msrb.mxu3 %v5518_v16  ;;  %527 = vmatpush.bf16.msrb.mxu0 %v5510_v17  ;;  %v5522_v2 = vld [vmem:[#allocation5 + $0x10] sm:$0xff]  ;;  %v5553_v3 = vld [vmem:[#allocation7 + $0x1e8] sm:$0xff]  ;;  %v5552_v5 = vld [vmem:[#allocation7 + $0x1e0] sm:$0xff] }
  0x32   :  { %346 = vmatpush.bf16.msra.mxu2 %v5501_v18  ;;  %332 = vmatpush.bf16.msra.mxu1 %v5493_v19  ;;  %v5545_v4 = vld [vmem:[#allocation7 + $0x1a8] sm:$0xff]  ;;  %v5544_v9 = vld [vmem:[#allocation7 + $0x1a0] sm:$0xff]  ;;  %v5551_v10 = vld [vmem:[#allocation7 + $0x1d8] sm:$0xff] }
  0x33   :  { %v5556_v6 = vld [vmem:[#allocation5 + $0x20] sm:$0xff]  ;;  %v5543_v11 = vld [vmem:[#allocation7 + $0x198] sm:$0xff]  ;;  %v5550_v12 = vld [vmem:[#allocation7 + $0x1d0] sm:$0xff] }
  0x34   :  { %v5542_v14 = vld [vmem:[#allocation7 + $0x190] sm:$0xff]  ;;  %v5549_v15 = vld [vmem:[#allocation7 + $0x1c8] sm:$0xff]  ;;  %v5548_v17 = vld [vmem:[#allocation7 + $0x1c0] sm:$0xff] }
  0x35   :  { %542 = vmatpush.bf16.msrb.mxu3 %v5517_v20  ;;  %528 = vmatpush.bf16.msrb.mxu0 %v5509_v21  ;;  %v5541_v16 = vld [vmem:[#allocation7 + $0x188] sm:$0xff]  ;;  %v5530_v18 = vld [vmem:[#allocation7 + $0x138] sm:$0xff] }
  0x36   :  { %347 = vmatpush.bf16.msra.mxu2 %v5500_v22  ;;  %333 = vmatpush.bf16.msra.mxu1 %v5492_v28  ;;  %v5540_v22 = vld [vmem:[#allocation7 + $0x180] sm:$0xff]  ;;  %v5528_v28 = vld [vmem:[#allocation7 + $0x128] sm:$0xff] }
  0x39   :  { %543 = vmatpush.bf16.msrb.mxu3 %v5516_v23  ;;  %529 = vmatpush.bf16.msrb.mxu0 %v5508_v24  ;;  %v5529_v23 = vld [vmem:[#allocation7 + $0x130] sm:$0xff] }
  0x3a   :  { %348 = vmatpush.bf16.msra.mxu2 %v5499_v29  ;;  %334 = vmatpush.bf16.msra.mxu1 %v5491_v32  ;;  %v5527_v29 = vld [vmem:[#allocation7 + $0x120] sm:$0xff]  ;;  %v5564_v32 = vld [vmem:[#allocation7 + $0x238] sm:$0xff] }
  0x3d   :  { %544 = vmatpush.bf16.msrb.mxu3 %v5515_v25  ;;  %530 = vmatpush.bf16.msrb.mxu0 %v5507_v31  ;;  %v5525_v31 = vld [vmem:[#allocation7 + $0x110] sm:$0xff] }
  0x3e   :  { %349 = vmatpush.bf16.msra.mxu2 %v5498_v33  ;;  %335 = vmatpush.bf16.msra.mxu1 %v5490_v36  ;;  %v5524_v33 = vld [vmem:[#allocation7 + $0x108] sm:$0xff]  ;;  %v5523_v36 = vld [vmem:[#allocation7 + $0x100] sm:$0xff] }
  0x41   :  { %545 = vmatpush.bf16.msrb.mxu3 %v5514_v26  ;;  %531 = vmatpush.bf16.msrb.mxu0 %v5506_v34  ;;  %v5572_v34 = vld [vmem:[#allocation7 + $0x278] sm:$0xff] }
  0x42   :  { %350 = vmatpush.bf16.msra.mxu2 %v5497_v37  ;;  %336 = vmatpush.bf16.msra.mxu1 %v5489_v39  ;;  %v5571_v37 = vld [vmem:[#allocation7 + $0x270] sm:$0xff]  ;;  %v6259_v39 = vld [vmem:[#allocation8] ss:$0 sm:$0xff] }
  0x44   :  { %546 = vmatmul.bf16.vlgmr.msrb.gmra.mxu3 %v6235_v0 }
  0x45   :  { %771 = vmatpush.bf16.msra.mxu3 %v6244_v27  ;;  %739 = vmatpush.bf16.msra.mxu0 %v5538_v35  ;;  %v5563_v35 = vld [vmem:[#allocation7 + $0x230] sm:$0xff] }
  0x46   :  { %351 = vmatmul.bf16.vlgmr.msra.gmra.mxu2 %v6237_v1  ;;  %570 = vmatpush.bf16.msrb.mxu1 %v6235_v0 }
  0x47   :  { %725 = vmatpush.bf16.msrb.mxu2 %v5530_v18  ;;  %v5586_v18 = vld [vmem:[#allocation7 + $0x2e0] sm:$0xff] }
  0x49   :  { %740 = vmatpush.bf16.msra.mxu0 %v5537_v38  ;;  %934 = vmatpush.bf16.msrb.mxu3 %v5555_v60  ;;  %v5562_v38 = vld [vmem:[#allocation7 + $0x228] sm:$0xff] }
  0x4b   :  { %726 = vmatpush.bf16.msrb.mxu2 %v5529_v23  ;;  %v5585_v23 = vld [vmem:[#allocation7 + $0x2d8] sm:$0xff] }
  0x4d   :  { %741 = vmatpush.bf16.msra.mxu0 %v5536_v40  ;;  %935 = vmatpush.bf16.msrb.mxu3 %v5554_v62  ;;  %v5570_v40 = vld [vmem:[#allocation7 + $0x268] sm:$0xff] }
  0x4f   :  { %727 = vmatpush.bf16.msrb.mxu2 %v5528_v28  ;;  %v5583_v28 = vld [vmem:[#allocation7 + $0x2c8] sm:$0xff] }
  0x51   :  { %742 = vmatpush.bf16.msra.mxu0 %v5535_v41  ;;  %936 = vmatpush.bf16.msrb.mxu3 %v5553_v3  ;;  %v5561_v41 = vld [vmem:[#allocation7 + $0x220] sm:$0xff] }
  0x53   :  { %728 = vmatpush.bf16.msrb.mxu2 %v5527_v29  ;;  %v5576_v29 = vld [vmem:[#allocation7 + $0x290] sm:$0xff] }
  0x54   :  { %4309 = vmatmul.msk.bf16.vlgmr.msra.gmra.mxu3 %vm165_vm0, %v5539_v30  ;;  %v5526_v30 = vld [vmem:[#allocation7 + $0x118] sm:$0xff] }
  0x55   :  { %743 = vmatpush.bf16.msra.mxu0 %v5534_v42  ;;  %937 = vmatpush.bf16.msrb.mxu3 %v5552_v5  ;;  %v5589_v5 = vld [vmem:[#allocation7 + $0x2f8] sm:$0xff] }
  0x57   :  { %729 = vmatpush.bf16.msrb.mxu2 %v5526_v30  ;;  %v5582_v30 = vld [vmem:[#allocation7 + $0x2c0] sm:$0xff] }
  0x59   :  { %744 = vmatpush.bf16.msra.mxu0 %v5533_v43  ;;  %938 = vmatpush.bf16.msrb.mxu3 %v5551_v10  ;;  %v5588_v10 = vld [vmem:[#allocation7 + $0x2f0] sm:$0xff] }
  0x5b   :  { %730 = vmatpush.bf16.msrb.mxu2 %v5525_v31  ;;  %v5575_v31 = vld [vmem:[#allocation7 + $0x288] sm:$0xff] }
  0x5d   :  { %745 = vmatpush.bf16.msra.mxu0 %v5532_v44  ;;  %939 = vmatpush.bf16.msrb.mxu3 %v5550_v12  ;;  %v5569_v44 = vld [vmem:[#allocation7 + $0x260] sm:$0xff] }
  0x5f   :  { %731 = vmatpush.bf16.msrb.mxu2 %v5524_v33  ;;  %v5621_v33 = vld [vmem:[#allocation7 + $0x3f0] sm:$0xff] }
  0x61   :  { %746 = vmatpush.bf16.msra.mxu0 %v5531_v45  ;;  %940 = vmatpush.bf16.msrb.mxu3 %v5549_v15 }
  0x63   :  { %732 = vmatpush.bf16.msrb.mxu2 %v5523_v36  ;;  %v5614_v36 = vld [vmem:[#allocation7 + $0x3b8] sm:$0xff] }
  0x65   :  { %941 = vmatpush.bf16.msrb.mxu3 %v5548_v17 }
  0x67   :  { %1165 = vmatpush.bf16.msra.mxu2 %v6237_v1 }
  0x68   :  { %942 = vmatmul.bf16.vlgmr.msrb.gmra.mxu3 %v6235_v0 }
  0xa1   :  { %v178_v46 = vpop.f32.mrf.mxu0 }
  0xa2   :  { %v183_v48 = vpack.c.bf16 %v178_v46, %v178_v46 }
  0xa4   :  { %v187_v51 = vunpack.c.l.b16 %v183_v48 }
  0xa7   :  { %v377_v47 = vpop.f32.mrf.mxu3 }
  0xa8   :  { %v382_v52 = vpack.c.bf16 %v377_v47, %v377_v47  ;;  %v5560_v47 = vld [vmem:[#allocation7 + $0x218] sm:$0xff] }
  0xa9   :  { %v180_v49 = vpop.f32.mrf.mxu0 }
  0xaa   :  { %v184_v50 = vpack.c.bf16 %v180_v49, %v180_v49  ;;  %v386_v56 = vunpack.c.l.b16 %v382_v52  ;;  %v5568_v49 = vld [vmem:[#allocation7 + $0x258] sm:$0xff]  ;;  %v5567_v52 = vld [vmem:[#allocation7 + $0x250] sm:$0xff] }
  0xac   :  { %v188_v53 = vunpack.c.l.b16 %v184_v50 }
  0xae   :  { %v189_v54 = vpack.c.b16 %v188_v53, %v187_v51  ;;  %v5559_v51 = vld [vmem:[#allocation7 + $0x210] sm:$0xff]  ;;  %v5558_v53 = vld [vmem:[#allocation7 + $0x208] sm:$0xff] }
  0xaf   :  { %v379_v55 = vpop.f32.mrf.mxu3 }
  0xb0   :  { %v383_v57 = vpack.c.bf16 %v379_v55, %v379_v55  ;;  %337 = vmatmul.bf16.vlgmr.msra.gmra.mxu1 %v189_v54  ;;  %v5566_v55 = vld [vmem:[#allocation7 + $0x248] sm:$0xff] }
  0xb1   :  { %920 = vmatpush.bf16.msra.mxu1 %v5547_v61 }
  0xb2   :  { %v387_v58 = vunpack.c.l.b16 %v383_v57  ;;  %v5557_v57 = vld [vmem:[#allocation7 + $0x200] sm:$0xff] }
  0xb4   :  { %v388_v59 = vpack.c.b16 %v387_v58, %v386_v56  ;;  %v5565_v58 = vld [vmem:[#allocation7 + $0x240] sm:$0xff] }
  0xb5   :  { %921 = vmatpush.bf16.msra.mxu1 %v5546_v63 }
  0xb6   :  { %532 = vmatmul.bf16.vlgmr.msrb.gmra.mxu0 %v388_v59 }
  0xb7   :  { %968 = vmatpush.bf16.msrb.mxu0 %v6244_v27 }
  0xb9   :  { %922 = vmatpush.bf16.msra.mxu1 %v5545_v4 }
  0xbd   :  { %923 = vmatpush.bf16.msra.mxu1 %v5544_v9 }
  0xc0   :  { %4236 = vmatmul.msk.bf16.vlgmr.msrb.gmra.mxu1 %vm165_vm0, %v5522_v2 }
  0xc1   :  { %924 = vmatpush.bf16.msra.mxu1 %v5543_v11  ;;  %v5580_v11 = vld [vmem:[#allocation7 + $0x2b0] sm:$0xff] }
  0xc5   :  { %925 = vmatpush.bf16.msra.mxu1 %v5542_v14  ;;  %v5587_v14 = vld [vmem:[#allocation7 + $0x2e8] sm:$0xff] }
  0xc6   :  { %747 = vmatmul.bf16.vlgmr.msra.gmra.mxu0 %v6244_v27 }
  0xc7   :  { %v6254_v7 = vpop.f32.mrf.mxu3  ;;  %1117 = vmatpush.bf16.msra.mxu0 %v5564_v32  ;;  %v5622_v32 = vld [vmem:[#allocation7 + $0x3f8] sm:$0xff] }
  0xc9   :  { %926 = vmatpush.bf16.msra.mxu1 %v5541_v16  ;;  %v352_v43 = vpop.f32.mrf.mxu2 }
  0xcb   :  { %1118 = vmatpush.bf16.msra.mxu0 %v5563_v35  ;;  %v5598_v35 = vld [vmem:[#allocation7 + $0x338] sm:$0xff] }
  0xcd   :  { %927 = vmatpush.bf16.msra.mxu1 %v5540_v22  ;;  %v5579_v22 = vld [vmem:[#allocation7 + $0x2a8] sm:$0xff] }
  0xcf   :  { %v6256_v8 = vpop.f32.mrf.mxu3  ;;  %1119 = vmatpush.bf16.msra.mxu0 %v5562_v38  ;;  %v5620_v38 = vld [vmem:[#allocation7 + $0x3e8] sm:$0xff] }
  0xd1   :  { %1131 = vmatpush.bf16.msrb.mxu1 %v5572_v34  ;;  %v5574_v34 = vld [vmem:[#allocation7 + $0x280] sm:$0xff] }
  0xd3   :  { %1120 = vmatpush.bf16.msra.mxu0 %v5561_v41  ;;  %v5613_v41 = vld [vmem:[#allocation7 + $0x3b0] sm:$0xff] }
  0xd5   :  { %1132 = vmatpush.bf16.msrb.mxu1 %v5571_v37  ;;  %v5606_v37 = vld [vmem:[#allocation7 + $0x378] sm:$0xff] }
  0xd6   :  { %4378 = vmatmul.msk.bf16.vlgmr.msrb.gmra.mxu0 %vm165_vm0, %v5556_v6  ;;  %v5581_v6 = vld [vmem:[#allocation7 + $0x2b8] sm:$0xff] }
  0xd7   :  { %v773_v13 = vpop.f32.mrf.mxu3  ;;  %1121 = vmatpush.bf16.msra.mxu0 %v5560_v47  ;;  %1314 = vmatpush.bf16.msra.mxu3 %v5581_v6  ;;  %v5604_v47 = vld [vmem:[#allocation7 + $0x368] sm:$0xff] }
  0xd8   :  { %v778_v19 = vpack.c.bf16 %v773_v13, %v773_v13  ;;  %v5573_v13 = vld [vmem:[#allocation5 + $0x28] sm:$0xff]  ;;  %v5592_v6 = vld [vmem:[#allocation7 + $0x308] sm:$0xff] }
  0xd9   :  { %1133 = vmatpush.bf16.msrb.mxu1 %v5570_v40  ;;  %v5597_v40 = vld [vmem:[#allocation7 + $0x330] sm:$0xff] }
  0xda   :  { %v782_v24 = vunpack.c.l.b16 %v778_v19 }
  0xdb   :  { %1122 = vmatpush.bf16.msra.mxu0 %v5559_v51  ;;  %1315 = vmatpush.bf16.msra.mxu3 %v5580_v11  ;;  %v5595_v51 = vld [vmem:[#allocation7 + $0x320] sm:$0xff]  ;;  %v5653_v11 = vld [vmem:[#allocation7 + $0x4f0] sm:$0xff] }
  0xdd   :  { %1134 = vmatpush.bf16.msrb.mxu1 %v5569_v44  ;;  %v5596_v44 = vld [vmem:[#allocation7 + $0x328] sm:$0xff] }
  0xdf   :  { %v775_v20 = vpop.f32.mrf.mxu3  ;;  %1123 = vmatpush.bf16.msra.mxu0 %v5558_v53  ;;  %1316 = vmatpush.bf16.msra.mxu3 %v5579_v22  ;;  %v5603_v53 = vld [vmem:[#allocation7 + $0x360] sm:$0xff] }
  0xe0   :  { %v779_v21 = vpack.c.bf16 %v775_v20, %v775_v20  ;;  %v5651_v22 = vld [vmem:[#allocation7 + $0x4e0] sm:$0xff] }
  0xe1   :  { %1135 = vmatpush.bf16.msrb.mxu1 %v5568_v49  ;;  %v5618_v49 = vld [vmem:[#allocation7 + $0x3d8] sm:$0xff] }
  0xe2   :  { %v783_v25 = vunpack.c.l.b16 %v779_v21  ;;  %v5590_v21 = vld [vmem:[#allocation5 + $0x30] sm:$0xff] }
  0xe3   :  { %1124 = vmatpush.bf16.msra.mxu0 %v5557_v57  ;;  %v5610_v57 = vld [vmem:[#allocation7 + $0x398] sm:$0xff] }
  0xe4   :  { %v784_v26 = vpack.c.b16 %v783_v25, %v782_v24  ;;  %v5578_v24 = vld [vmem:[#allocation7 + $0x2a0] sm:$0xff]  ;;  %v5584_v25 = vld [vmem:[#allocation7 + $0x2d0] sm:$0xff] }
  0xe5   :  { %1136 = vmatpush.bf16.msrb.mxu1 %v5567_v52  ;;  %1317 = vmatpush.bf16.msra.mxu3 %v5578_v24  ;;  %v5611_v52 = vld [vmem:[#allocation7 + $0x3a0] sm:$0xff] }
  0xe6   :  { %928 = vmatmul.bf16.vlgmr.msra.gmra.mxu1 %v784_v26  ;;  %v5577_v26 = vld [vmem:[#allocation7 + $0x298] sm:$0xff] }
  0xe7   :  { %1362 = vmatpush.bf16.msrb.mxu0 %v6237_v1 }
  0xe9   :  { %1137 = vmatpush.bf16.msrb.mxu1 %v5566_v55  ;;  %1318 = vmatpush.bf16.msra.mxu3 %v5577_v26  ;;  %v5617_v55 = vld [vmem:[#allocation7 + $0x3d0] sm:$0xff]  ;;  %v5636_v26 = vld [vmem:[#allocation7 + $0x468] sm:$0xff] }
  0xed   :  { %1138 = vmatpush.bf16.msrb.mxu1 %v5565_v58  ;;  %1319 = vmatpush.bf16.msra.mxu3 %v5576_v29  ;;  %v5602_v58 = vld [vmem:[#allocation7 + $0x358] sm:$0xff]  ;;  %v5627_v29 = vld [vmem:[#allocation7 + $0x420] sm:$0xff] }
  0xf1   :  { %1320 = vmatpush.bf16.msra.mxu3 %v5575_v31  ;;  %1511 = vmatpush.bf16.msra.mxu1 %v5598_v35  ;;  %v5649_v31 = vld [vmem:[#allocation7 + $0x4d0] sm:$0xff] }
  0xf5   :  { %1321 = vmatpush.bf16.msra.mxu3 %v5574_v34  ;;  %1512 = vmatpush.bf16.msra.mxu1 %v5597_v40  ;;  %v5625_v40 = vld [vmem:[#allocation7 + $0x410] sm:$0xff] }
  0xf6   :  { %1139 = vmatmul.bf16.vlgmr.msrb.gmra.mxu1 %v6237_v1 }
  0xf9   :  { %1675 = vmatpush.bf16.msrb.mxu3 %v5614_v36  ;;  %1513 = vmatpush.bf16.msra.mxu1 %v5596_v44  ;;  %v5647_v44 = vld [vmem:[#allocation7 + $0x4c0] sm:$0xff] }
  0xfd   :  { %1676 = vmatpush.bf16.msrb.mxu3 %v5613_v41  ;;  %1514 = vmatpush.bf16.msra.mxu1 %v5595_v51 }
 0x12d   :  { %v338_v42 = vpop.f32.mrf.mxu1 }
 0x12e   :  { %v339_v45 = vadd.f32 %v6259_v39, %v338_v42  ;;  %v5605_v42 = vld [vmem:[#allocation7 + $0x370] sm:$0xff] }
 0x130   :  { %v6263_v46 = vadd.f32 %v352_v43, %v339_v45  ;;  %v5619_v43 = vld [vmem:[#allocation7 + $0x3e0] sm:$0xff]  ;;  %v5612_v45 = vld [vmem:[#allocation7 + $0x3a8] sm:$0xff] }
 0x131   :  { %1677 = vmatpush.bf16.msrb.mxu3 %v5612_v45  ;;  %v5624_v45 = vld [vmem:[#allocation7 + $0x408] sm:$0xff] }
 0x133   :  { %v6265_v48 = vpop.f32.mrf.mxu0 }
 0x135   :  { %v6267_v50 = vpop.f32.mrf.mxu1  ;;  %1678 = vmatpush.bf16.msrb.mxu3 %v5611_v52 }
 0x139   :  { %1679 = vmatpush.bf16.msrb.mxu3 %v5610_v57 }
 0x13b   :  { %v6269_v54 = vpop.f32.mrf.mxu0 }
 0x13d   :  { %v572_v56 = vpop.f32.mrf.mxu1 }
 0x13e   :  { %v577_v60 = vpack.c.bf16 %v572_v56, %v572_v56  ;;  %v5594_v56 = vld [vmem:[#allocation7 + $0x318] sm:$0xff] }
 0x13f   :  { %1515 = vmatpush.bf16.msra.mxu1 %v5594_v56 }
 0x140   :  { %v581_v63 = vunpack.c.l.b16 %v577_v60  ;;  %v5616_v60 = vld [vmem:[#allocation7 + $0x3c8] sm:$0xff] }
 0x143   :  { %v6272_v59 = vpop.f32.mrf.mxu0 }
 0x145   :  { %v574_v61 = vpop.f32.mrf.mxu1 }
 0x146   :  { %v578_v62 = vpack.c.bf16 %v574_v61, %v574_v61  ;;  %v5593_v61 = vld [vmem:[#allocation7 + $0x310] sm:$0xff] }
 0x147   :  { %1516 = vmatpush.bf16.msra.mxu1 %v5593_v61  ;;  %v5631_v61 = vld [vmem:[#allocation7 + $0x440] sm:$0xff] }
 0x148   :  { %v582_v2 = vunpack.c.l.b16 %v578_v62  ;;  %v5609_v62 = vld [vmem:[#allocation7 + $0x390] sm:$0xff] }
 0x149   :  { %1680 = vmatpush.bf16.msrb.mxu3 %v5609_v62 }
 0x14a   :  { %v583_v3 = vpack.c.b16 %v582_v2, %v581_v63  ;;  %v5601_v63 = vld [vmem:[#allocation7 + $0x350] sm:$0xff]  ;;  %v5615_v2 = vld [vmem:[#allocation7 + $0x3c0] sm:$0xff] }
 0x14b   :  { %v6275_v4 = vpop.f32.mrf.mxu0  ;;  %1517 = vmatpush.bf16.msra.mxu1 %v5592_v6 }
 0x14c   :  { %733 = vmatmul.bf16.vlgmr.msrb.gmra.mxu2 %v583_v3  ;;  %v6280_v3 = vpop.f32.mrf.mxu2 }
 0x14d   :  { %1328 = vmatpush.bf16.msrb.mxu2 %v5589_v5  ;;  %v5654_v5 = vld [vmem:[#allocation7 + $0x4f8] sm:$0xff] }
 0x151   :  { %1329 = vmatpush.bf16.msrb.mxu2 %v5588_v10  ;;  %v5600_v10 = vld [vmem:[#allocation7 + $0x348] sm:$0xff] }
 0x153   :  { %v970_v9 = vpop.f32.mrf.mxu0 }
 0x154   :  { %v975_v12 = vpack.c.bf16 %v970_v9, %v970_v9  ;;  %v5608_v9 = vld [vmem:[#allocation7 + $0x388] sm:$0xff] }
 0x155   :  { %1330 = vmatpush.bf16.msrb.mxu2 %v5587_v14  ;;  %1681 = vmatpush.bf16.msrb.mxu3 %v5608_v9  ;;  %v5607_v14 = vld [vmem:[#allocation7 + $0x380] sm:$0xff] }
 0x156   :  { %v979_v16 = vunpack.c.l.b16 %v975_v12  ;;  %v5643_v9 = vld [vmem:[#allocation7 + $0x4a0] sm:$0xff] }
 0x159   :  { %1331 = vmatpush.bf16.msrb.mxu2 %v5586_v18  ;;  %1682 = vmatpush.bf16.msrb.mxu3 %v5607_v14  ;;  %v5638_v18 = vld [vmem:[#allocation7 + $0x478] sm:$0xff] }
 0x15a   :  { %v5642_v14 = vld [vmem:[#allocation7 + $0x498] sm:$0xff] }
 0x15b   :  { %v972_v15 = vpop.f32.mrf.mxu0 }
 0x15c   :  { %v976_v17 = vpack.c.bf16 %v972_v15, %v972_v15  ;;  %4447 = vmatmul.msk.bf16.vlgmr.msra.gmra.mxu2 %vm165_vm0, %v5573_v13  ;;  %v5591_v13 = vld [vmem:[#allocation7 + $0x300] sm:$0xff]  ;;  %v5630_v15 = vld [vmem:[#allocation7 + $0x438] sm:$0xff] }
 0x15d   :  { %1332 = vmatpush.bf16.msrb.mxu2 %v5585_v23  ;;  %1518 = vmatpush.bf16.msra.mxu1 %v5591_v13  ;;  %v5628_v23 = vld [vmem:[#allocation7 + $0x428] sm:$0xff] }
 0x15e   :  { %v980_v19 = vunpack.c.l.b16 %v976_v17 }
 0x160   :  { %v981_v20 = vpack.c.b16 %v980_v19, %v979_v16  ;;  %v5599_v16 = vld [vmem:[#allocation7 + $0x340] sm:$0xff]  ;;  %v5652_v19 = vld [vmem:[#allocation7 + $0x4e8] sm:$0xff] }
 0x161   :  { %1333 = vmatpush.bf16.msrb.mxu2 %v5584_v25  ;;  %1839 = vmatpush.bf16.msrb.mxu1 %v5630_v15 }
 0x162   :  { %1125 = vmatmul.bf16.vlgmr.msra.gmra.mxu0 %v981_v20  ;;  %v5629_v20 = vld [vmem:[#allocation7 + $0x430] sm:$0xff] }
 0x163   :  { %1525 = vmatpush.bf16.msra.mxu0 %v5606_v37  ;;  %v6283_v12 = vpop.f32.mrf.mxu1  ;;  %v5634_v37 = vld [vmem:[#allocation7 + $0x458] sm:$0xff] }
 0x165   :  { %1334 = vmatpush.bf16.msrb.mxu2 %v5583_v28  ;;  %1840 = vmatpush.bf16.msrb.mxu1 %v5629_v20  ;;  %v5650_v28 = vld [vmem:[#allocation7 + $0x4d8] sm:$0xff]  ;;  %v5670_v20 = vld [vmem:[#allocation10 + $0x78] sm:$0xff] }
 0x167   :  { %1526 = vmatpush.bf16.msra.mxu0 %v5605_v42 }
 0x169   :  { %1335 = vmatpush.bf16.msrb.mxu2 %v5582_v30  ;;  %1841 = vmatpush.bf16.msrb.mxu1 %v5628_v23  ;;  %v5635_v30 = vld [vmem:[#allocation7 + $0x460] sm:$0xff]  ;;  %v5667_v23 = vld [vmem:[#allocation10 + $0x60] sm:$0xff] }
 0x16b   :  { %1527 = vmatpush.bf16.msra.mxu0 %v5604_v47  ;;  %v6288_v24 = vpop.f32.mrf.mxu1 }
 0x16c   :  { %1336 = vmatmul.bf16.vlgmr.msrb.gmra.mxu2 %v6244_v27 }
 0x16d   :  { %1689 = vmatpush.bf16.msra.mxu2 %v5622_v32  ;;  %1842 = vmatpush.bf16.msrb.mxu1 %v5627_v29  ;;  %v6292_v32 = vld [vmem:[#allocation8 + $0x4] ss:$0 sm:$0xff]  ;;  %v6305_v29 = vpop.f32.mrf.mxu3 }
 0x16f   :  { %1528 = vmatpush.bf16.msra.mxu0 %v5603_v53  ;;  %v5632_v53 = vld [vmem:[#allocation7 + $0x448] sm:$0xff] }
 0x171   :  { %1690 = vmatpush.bf16.msra.mxu2 %v5621_v33  ;;  %v5626_v33 = vld [vmem:[#allocation7 + $0x418] sm:$0xff] }
 0x172   :  { %4516 = vmatmul.msk.bf16.vlgmr.msrb.gmra.mxu0 %vm165_vm0, %v5590_v21  ;;  %v5637_v21 = vld [vmem:[#allocation7 + $0x470] sm:$0xff]  ;;  %1843 = vmatpush.bf16.msrb.mxu1 %v5626_v33 }
 0x173   :  { %1529 = vmatpush.bf16.msra.mxu0 %v5602_v58  ;;  %v1140_v34 = vpop.f32.mrf.mxu1 }
 0x175   :  { %1691 = vmatpush.bf16.msra.mxu2 %v5620_v38  ;;  %v5648_v38 = vld [vmem:[#allocation7 + $0x4c8] sm:$0xff]  ;;  %v6307_v33 = vpop.f32.mrf.mxu3 }
 0x176   :  { %1844 = vmatpush.bf16.msrb.mxu1 %v5625_v40  ;;  %v5660_v40 = vld [vmem:[#allocation10 + $0x28] sm:$0xff] }
 0x177   :  { %1530 = vmatpush.bf16.msra.mxu0 %v5601_v63  ;;  %v5645_v63 = vld [vmem:[#allocation7 + $0x4b0] sm:$0xff] }
 0x179   :  { %1692 = vmatpush.bf16.msra.mxu2 %v5619_v43  ;;  %v5633_v43 = vld [vmem:[#allocation7 + $0x450] sm:$0xff] }
 0x17a   :  { %1845 = vmatpush.bf16.msrb.mxu1 %v5624_v45  ;;  %v5659_v45 = vld [vmem:[#allocation10 + $0x20] sm:$0xff] }
 0x17b   :  { %1531 = vmatpush.bf16.msra.mxu0 %v5600_v10 }
 0x17d   :  { %1693 = vmatpush.bf16.msra.mxu2 %v5618_v49 }
 0x17f   :  { %1532 = vmatpush.bf16.msra.mxu0 %v5599_v16  ;;  %v5641_v16 = vld [vmem:[#allocation7 + $0x490] sm:$0xff] }
 0x181   :  { %1694 = vmatpush.bf16.msra.mxu2 %v5617_v55  ;;  %v5623_v55 = vld [vmem:[#allocation7 + $0x400] sm:$0xff] }
 0x182   :  { %1533 = vmatmul.bf16.vlgmr.msra.gmra.mxu0 %v6237_v1  ;;  %1846 = vmatpush.bf16.msrb.mxu1 %v5623_v55  ;;  %v5853_v55 = vld [vmem:[#allocation8 + $0x6] ss:$0 sm:$0xff] }
 0x183   :  { %1853 = vmatpush.bf16.msrb.mxu0 %v5638_v18  ;;  %v5640_v18 = vld [vmem:[#allocation7 + $0x488] sm:$0xff] }
 0x185   :  { %1695 = vmatpush.bf16.msra.mxu2 %v5616_v60  ;;  %v5646_v60 = vld [vmem:[#allocation7 + $0x4b8] sm:$0xff] }
 0x187   :  { %1854 = vmatpush.bf16.msrb.mxu0 %v5637_v21  ;;  %v5669_v21 = vld [vmem:[#allocation10 + $0x70] sm:$0xff] }
 0x189   :  { %1696 = vmatpush.bf16.msra.mxu2 %v5615_v2  ;;  %v5644_v2 = vld [vmem:[#allocation7 + $0x4a8] sm:$0xff] }
 0x18b   :  { %1855 = vmatpush.bf16.msrb.mxu0 %v5636_v26  ;;  %v5665_v26 = vld [vmem:[#allocation10 + $0x50] sm:$0xff] }
 0x18c   :  { %1697 = vmatmul.bf16.vlgmr.msra.gmra.mxu2 %v6237_v1 }
 0x18d   :  { %2017 = vmatpush.bf16.msrb.mxu2 %v5654_v5 }
 0x18f   :  { %1856 = vmatpush.bf16.msrb.mxu0 %v5635_v30  ;;  %v5663_v30 = vld [vmem:[#allocation10 + $0x40] sm:$0xff] }
 0x191   :  { %2018 = vmatpush.bf16.msrb.mxu2 %v5653_v11 }
 0x193   :  { %1857 = vmatpush.bf16.msrb.mxu0 %v5634_v37  ;;  %v5691_v37 = vld [vmem:[#allocation10 + $0x120] sm:$0xff] }
 0x195   :  { %2019 = vmatpush.bf16.msrb.mxu2 %v5652_v19  ;;  %v5639_v19 = vld [vmem:[#allocation7 + $0x480] sm:$0xff] }
 0x197   :  { %1858 = vmatpush.bf16.msrb.mxu0 %v5633_v43  ;;  %v5690_v43 = vld [vmem:[#allocation10 + $0x118] sm:$0xff] }
 0x199   :  { %2020 = vmatpush.bf16.msrb.mxu2 %v5651_v22  ;;  %v5668_v22 = vld [vmem:[#allocation10 + $0x68] sm:$0xff] }
 0x19b   :  { %1859 = vmatpush.bf16.msrb.mxu0 %v5632_v53  ;;  %v5658_v53 = vld [vmem:[#allocation10 + $0x18] sm:$0xff] }
 0x19d   :  { %2021 = vmatpush.bf16.msrb.mxu2 %v5650_v28  ;;  %v5664_v28 = vld [vmem:[#allocation10 + $0x48] sm:$0xff] }
 0x19f   :  { %1860 = vmatpush.bf16.msrb.mxu0 %v5631_v61 }
 0x1a1   :  { %2022 = vmatpush.bf16.msrb.mxu2 %v5649_v31  ;;  %v5694_v31 = vld [vmem:[#allocation10 + $0x138] sm:$0xff] }
 0x1a2   :  { %1861 = vmatmul.bf16.vlgmr.msrb.gmra.mxu0 %v6244_v27 }
 0x1a5   :  { %2023 = vmatpush.bf16.msrb.mxu2 %v5648_v38 }
 0x1a9   :  { %2024 = vmatpush.bf16.msrb.mxu2 %v5647_v44 }
 0x1ac   :  { %2025 = vmatmul.bf16.vlgmr.msrb.gmra.mxu2 %v6235_v0 }
 0x1cf   :  { %v6285_v17 = vpop.f32.mrf.mxu2 }
 0x1d7   :  { %v6290_v25 = vpop.f32.mrf.mxu2 }
 0x1df   :  { %v1126_v35 = vpop.f32.mrf.mxu0  ;;  %v1167_v36 = vpop.f32.mrf.mxu2 }
 0x1e0   :  { %v1127_v41 = vadd.f32 %v6292_v32, %v1126_v35  ;;  %v1172_v49 = vpack.c.bf16 %v1167_v36, %v1167_v36  ;;  %v5692_v35 = vld [vmem:[#allocation10 + $0x128] sm:$0xff]  ;;  %v5661_v36 = vld [vmem:[#allocation10 + $0x30] sm:$0xff] }
 0x1e2   :  { %v1141_v42 = vadd.f32 %v1140_v34, %v1127_v41  ;;  %v1176_v57 = vunpack.c.l.b16 %v1172_v49  ;;  %v5662_v34 = vld [vmem:[#allocation10 + $0x38] sm:$0xff]  ;;  %v1142_v41 = vpop.f32.mrf.mxu1  ;;  %v5689_v49 = vld [vmem:[#allocation10 + $0x110] sm:$0xff] }
 0x1e3   :  { %2211 = vmatpush.bf16.msra.mxu0 %v5662_v34 }
 0x1e4   :  { %v6296_v47 = vadd.f32 %v1141_v42, %v6263_v46 }
 0x1e7   :  { %v6298_v51 = vpop.f32.mrf.mxu0  ;;  %v1169_v52 = vpop.f32.mrf.mxu2  ;;  %2212 = vmatpush.bf16.msra.mxu0 %v5661_v36 }
 0x1e8   :  { %v1173_v56 = vpack.c.bf16 %v1169_v52, %v1169_v52 }
 0x1ea   :  { %v1177_v58 = vunpack.c.l.b16 %v1173_v56 }
 0x1eb   :  { %2213 = vmatpush.bf16.msra.mxu0 %v5660_v40 }
 0x1ec   :  { %v1178_v46 = vpack.c.b16 %v1177_v58, %v1176_v57  ;;  %v5688_v57 = vld [vmem:[#allocation10 + $0x108] sm:$0xff] }
 0x1ee   :  { %1322 = vmatmul.bf16.vlgmr.msra.gmra.mxu3 %v1178_v46  ;;  %v5854_v46 = vld [vmem:[#allocation8 + $0x7] ss:$0 sm:$0xff] }
 0x1ef   :  { %v1364_v62 = vpop.f32.mrf.mxu0  ;;  %2003 = vmatpush.bf16.msra.mxu3 %v5646_v60  ;;  %2214 = vmatpush.bf16.msra.mxu0 %v5659_v45  ;;  %v5657_v60 = vld [vmem:[#allocation10 + $0x10] sm:$0xff] }
 0x1f0   :  { %v1369_v5 = vpack.c.bf16 %v1364_v62, %v1364_v62 }
 0x1f2   :  { %v1373_v10 = vunpack.c.l.b16 %v1369_v5  ;;  %v5656_v5 = vld [vmem:[#allocation10 + $0x8] sm:$0xff] }
 0x1f3   :  { %2004 = vmatpush.bf16.msra.mxu3 %v5645_v63  ;;  %2215 = vmatpush.bf16.msra.mxu0 %v5658_v53  ;;  %v5687_v63 = vld [vmem:[#allocation10 + $0x100] sm:$0xff]  ;;  %v5856_v53 = vld [vmem:[#allocation8 + $0x9] ss:$0 sm:$0xff] }
 0x1f7   :  { %v1366_v6 = vpop.f32.mrf.mxu0  ;;  %2005 = vmatpush.bf16.msra.mxu3 %v5644_v2  ;;  %2216 = vmatpush.bf16.msra.mxu0 %v5657_v60 }
 0x1f8   :  { %v1370_v11 = vpack.c.bf16 %v1366_v6, %v1366_v6  ;;  %v1129_v6 = vadd.f32 %v6292_v32, %v6298_v51 }
 0x1fa   :  { %v1374_v13 = vunpack.c.l.b16 %v1370_v11  ;;  %v5852_v11 = vld [vmem:[#allocation8 + $0x5] ss:$0 sm:$0xff] }
 0x1fb   :  { %2006 = vmatpush.bf16.msra.mxu3 %v5643_v9  ;;  %2217 = vmatpush.bf16.msra.mxu0 %v5656_v5 }
 0x1fc   :  { %v1375_v15 = vpack.c.b16 %v1374_v13, %v1373_v10 }
 0x1fe   :  { %1519 = vmatmul.bf16.vlgmr.msra.gmra.mxu1 %v1375_v15  ;;  %1683 = vmatmul.bf16.vlgmr.msrb.gmra.mxu3 %v6237_v1  ;;  %v5666_v1 = vld [vmem:[#allocation10 + $0x58] sm:$0xff] }
 0x1ff   :  { %2007 = vmatpush.bf16.msra.mxu3 %v5642_v14  ;;  %v1534_v44 = vpop.f32.mrf.mxu0  ;;  %v341_v14 = vadd.f32 %v6259_v39, %v6267_v50 }
 0x201   :  { %v355_v32 = vadd.f32 %v6280_v3, %v341_v14 }
 0x203   :  { %2008 = vmatpush.bf16.msra.mxu3 %v5641_v16 }
 0x207   :  { %2009 = vmatpush.bf16.msra.mxu3 %v5640_v18  ;;  %v1536_v62 = vpop.f32.mrf.mxu0  ;;  %v5655_v18 = vld [vmem:[#allocation10] sm:$0xff] }
 0x208   :  { %2218 = vmatpush.bf16.msra.mxu0 %v5655_v18 }
 0x20b   :  { %2010 = vmatpush.bf16.msra.mxu3 %v5639_v19  ;;  %v5850_v19 = vld [vmem:[#allocation8 + $0x2] ss:$0 sm:$0xff] }
 0x20c   :  { %v735_v39 = vadd.f32 %v5850_v19, %v6285_v17  ;;  %v737_v17 = vadd.f32 %v5850_v19, %v6290_v25 }
 0x20e   :  { %1847 = vmatmul.bf16.vlgmr.msrb.gmra.mxu1 %v6244_v27  ;;  %2011 = vmatmul.bf16.vlgmr.msra.gmra.mxu3 %v6235_v0  ;;  %v5693_v27 = vld [vmem:[#allocation10 + $0x130] sm:$0xff]  ;;  %v6309_v0 = vpop.f32.mrf.mxu2  ;;  %v751_v25 = vadd.f32 %v6275_v4, %v737_v17  ;;  %v5708_v17 = vld [vmem:[#allocation10 + $0x1a8] sm:$0xff] }
 0x20f   :  { %2225 = vmatpush.bf16.msrb.mxu3 %v5670_v20  ;;  %v1143_v20 = vadd.f32 %v1142_v41, %v1129_v6 }
 0x211   :  { %v1146_v50 = vadd.f32 %v1143_v20, %v355_v32 }
 0x213   :  { %2226 = vmatpush.bf16.msrb.mxu3 %v5669_v21 }
 0x216   :  { %v6311_v42 = vpop.f32.mrf.mxu2 }
 0x217   :  { %2227 = vmatpush.bf16.msrb.mxu3 %v5668_v22 }
 0x21b   :  { %2228 = vmatpush.bf16.msrb.mxu3 %v5667_v23 }
 0x21e   :  { %v1698_v58 = vpop.f32.mrf.mxu2 }
 0x21f   :  { %2229 = vmatpush.bf16.msrb.mxu3 %v5666_v1 }
 0x223   :  { %2230 = vmatpush.bf16.msrb.mxu3 %v5665_v26  ;;  %v5855_v26 = vld [vmem:[#allocation8 + $0x8] ss:$0 sm:$0xff] }
 0x226   :  { %v1700_v23 = vpop.f32.mrf.mxu2 }
 0x227   :  { %2231 = vmatpush.bf16.msrb.mxu3 %v5664_v28  ;;  %v5848_v28 = vld [vmem:[#allocation8 + $0x1] ss:$0 sm:$0xff] }
 0x228   :  { %v534_v3 = vadd.f32 %v5848_v28, %v6265_v48 }
 0x22b   :  { %2232 = vmatpush.bf16.msrb.mxu3 %v5663_v30  ;;  %v5849_v30 = vld [vmem:[#allocation8 + $0x3] ss:$0 sm:$0xff] }
 0x22c   :  { %v930_v41 = vadd.f32 %v5849_v30, %v6283_v12 }
 0x22f   :  { %2585 = vmatpush.bf16.msra.mxu3 %v5694_v31  ;;  %v2026_v60 = vpop.f32.mrf.mxu2 }
 0x233   :  { %2586 = vmatpush.bf16.msra.mxu3 %v5693_v27  ;;  %v1862_v27 = vpop.f32.mrf.mxu0 }
 0x237   :  { %2587 = vmatpush.bf16.msra.mxu3 %v5692_v35  ;;  %v2028_v20 = vpop.f32.mrf.mxu2 }
 0x23b   :  { %2588 = vmatpush.bf16.msra.mxu3 %v5691_v37 }
 0x23f   :  { %2589 = vmatpush.bf16.msra.mxu3 %v5690_v43  ;;  %v749_v43 = vadd.f32 %v6272_v59, %v735_v39 }
 0x243   :  { %2590 = vmatpush.bf16.msra.mxu3 %v5689_v49 }
 0x247   :  { %2591 = vmatpush.bf16.msra.mxu3 %v5688_v57  ;;  %v548_v57 = vadd.f32 %v6254_v7, %v534_v3  ;;  %v5680_v3 = vld [vmem:[#allocation10 + $0xc8] sm:$0xff] }
 0x24b   :  { %2592 = vmatpush.bf16.msra.mxu3 %v5687_v63 }
 0x271   :  { %v1323_v38 = vpop.f32.mrf.mxu3 }
 0x272   :  { %v1324_v22 = vadd.f32 %v5852_v11, %v1323_v38 }
 0x274   :  { %v1338_v35 = vadd.f32 %v6309_v0, %v1324_v22 }
 0x276   :  { %v1342_v0 = vadd.f32 %v1338_v35, %v749_v43  ;;  %v5685_v35 = vld [vmem:[#allocation10 + $0xf0] sm:$0xff]  ;;  %v5710_v43 = vld [vmem:[#allocation10 + $0x1b8] sm:$0xff] }
 0x279   :  { %v1325_v52 = vpop.f32.mrf.mxu3 }
 0x27b   :  { %v1520_v56 = vpop.f32.mrf.mxu1 }
 0x27c   :  { %v1521_v61 = vadd.f32 %v5853_v55, %v1520_v56 }
 0x27e   :  { %v1535_v9 = vadd.f32 %v1534_v44, %v1521_v61  ;;  %v1326_v44 = vadd.f32 %v5852_v11, %v1325_v52  ;;  %v536_v52 = vadd.f32 %v5848_v28, %v6269_v54 }
 0x280   :  { %v1539_v21 = vadd.f32 %v1535_v9, %v6296_v47  ;;  %v1340_v48 = vadd.f32 %v6311_v42, %v1326_v44  ;;  %v550_v14 = vadd.f32 %v6256_v8, %v536_v52  ;;  %v5678_v44 = vld [vmem:[#allocation10 + $0xb8] sm:$0xff]  ;;  %v5701_v52 = vld [vmem:[#allocation10 + $0x170] sm:$0xff] }
 0x281   :  { %v1684_v2 = vpop.f32.mrf.mxu3  ;;  %2395 = vmatpush.bf16.msra.mxu2 %v5678_v44 }
 0x282   :  { %v1685_v10 = vadd.f32 %v5854_v46, %v1684_v2  ;;  %v1864_v2 = vpop.f32.mrf.mxu0  ;;  %v1343_v42 = vadd.f32 %v1340_v48, %v751_v25  ;;  %v5673_v48 = vld [vmem:[#allocation10 + $0x90] sm:$0xff]  ;;  %v5699_v25 = vld [vmem:[#allocation10 + $0x160] sm:$0xff] }
 0x283   :  { %v1522_v13 = vpop.f32.mrf.mxu1 }
 0x284   :  { %v1699_v15 = vadd.f32 %v1698_v58, %v1685_v10  ;;  %v1523_v16 = vadd.f32 %v5853_v55, %v1522_v13  ;;  %v944_v58 = vadd.f32 %v6305_v29, %v930_v41  ;;  %v5679_v41 = vld [vmem:[#allocation10 + $0xc0] sm:$0xff] }
 0x286   :  { %v1703_v51 = vadd.f32 %v1699_v15, %v1539_v21  ;;  %v1537_v1 = vadd.f32 %v1536_v62, %v1523_v16  ;;  %v932_v62 = vadd.f32 %v5849_v30, %v6288_v24  ;;  %v948_v29 = vadd.f32 %v944_v58, %v548_v57  ;;  %v5705_v57 = vld [vmem:[#allocation10 + $0x190] sm:$0xff]  ;;  %v5704_v58 = vld [vmem:[#allocation10 + $0x188] sm:$0xff] }
 0x288   :  { %v2035_v47 = vmax.f32 %v1703_v51, 0.0  ;;  %v1540_v37 = vadd.f32 %v1537_v1, %v1146_v50  ;;  %v946_v54 = vadd.f32 %v6307_v33, %v932_v62  ;;  %v5686_v50 = vld [vmem:[#allocation10 + $0xf8] sm:$0xff]  ;;  %v5700_v62 = vld [vmem:[#allocation10 + $0x168] sm:$0xff] }
 0x289   :  { %v1686_v31 = vpop.f32.mrf.mxu3 }
 0x28a   :  { %v1687_v34 = vadd.f32 %v5854_v46, %v1686_v31  ;;  %v2041_v55 = vpack.c.bf16 %v2035_v47, %v2035_v47  ;;  %v949_v21 = vadd.f32 %v946_v54, %v550_v14  ;;  %v5683_v47 = vld [vmem:[#allocation10 + $0xe0] sm:$0xff] }
 0x28b   :  { %v1848_v36 = vpop.f32.mrf.mxu1 }
 0x28c   :  { %v1701_v38 = vadd.f32 %v1700_v23, %v1687_v34  ;;  %v1849_v40 = vadd.f32 %v5855_v26, %v1848_v36  ;;  %v2075_v5 = vunpack.c.l.b16 %v2041_v55  ;;  %v5869_v34 = vld [vmem:[#allocation5] sm:$0xff]  ;;  %v5684_v36 = vld [vmem:[#allocation10 + $0xe8] sm:$0xff] }
 0x28d   :  { %v5675_v55 = vld [vmem:[#allocation10 + $0xa0] sm:$0xff] }
 0x28e   :  { %v1704_v45 = vadd.f32 %v1701_v38, %v1540_v37  ;;  %v1863_v49 = vadd.f32 %v1862_v27, %v1849_v40  ;;  %v5682_v37 = vld [vmem:[#allocation10 + $0xd8] sm:$0xff]  ;;  %v5870_v38 = vld [vmem:[#allocation5 + $0x8] sm:$0xff]  ;;  %v5681_v40 = vld [vmem:[#allocation10 + $0xd0] sm:$0xff] }
 0x290   :  { %v2036_v56 = vmax.f32 %v1704_v45, 0.0  ;;  %v1867_v46 = vadd.f32 %v1863_v49, %v1342_v0  ;;  %v5677_v45 = vld [vmem:[#allocation10 + $0xb0] sm:$0xff]  ;;  %v5706_v0 = vld [vmem:[#allocation10 + $0x198] sm:$0xff] }
 0x291   :  { %v2012_v61 = vpop.f32.mrf.mxu3  ;;  %v5709_v49 = vld [vmem:[#allocation10 + $0x1b0] sm:$0xff]  ;;  %2396 = vmatpush.bf16.msra.mxu2 %v5677_v45 }
 0x292   :  { %v2042_v12 = vpack.c.bf16 %v2036_v56, %v2036_v56  ;;  %v2013_v59 = vadd.f32 %v5856_v53, %v2012_v61  ;;  %v2037_v11 = vmax.f32 %v1867_v46, 0.0  ;;  %v5707_v56 = vld [vmem:[#allocation10 + $0x1a0] sm:$0xff]  ;;  %v5674_v61 = vld [vmem:[#allocation10 + $0x98] sm:$0xff] }
 0x293   :  { %v1850_v63 = vpop.f32.mrf.mxu1  ;;  %v5671_v46 = vld [vmem:[#allocation10 + $0x80] sm:$0xff] }
 0x294   :  { %v2076_v6 = vunpack.c.l.b16 %v2042_v12  ;;  %v2027_v7 = vadd.f32 %v2026_v60, %v2013_v59  ;;  %v1851_v9 = vadd.f32 %v5855_v26, %v1850_v63  ;;  %v2043_v16 = vpack.c.bf16 %v2037_v11, %v2037_v11  ;;  %v5703_v60 = vld [vmem:[#allocation10 + $0x180] sm:$0xff]  ;;  %v5672_v12 = vld [vmem:[#allocation10 + $0x88] sm:$0xff]  ;;  %v5702_v59 = vld [vmem:[#allocation10 + $0x178] sm:$0xff] }
 0x295   :  { %v5698_v63 = vld [vmem:[#allocation10 + $0x158] sm:$0xff] }
 0x296   :  { %v6331_v10 = vpack.c.b16 %v2076_v6, %v2075_v5  ;;  %v1865_v13 = vadd.f32 %v1864_v2, %v1851_v9  ;;  %v2031_v15 = vadd.f32 %v2027_v7, %v948_v29  ;;  %v2447_v51 = vunpack.c.l.b16 %v2043_v16  ;;  %v5697_v2 = vld [vmem:[#allocation10 + $0x150] sm:$0xff]  ;;  %v5696_v5 = vld [vmem:[#allocation10 + $0x148] sm:$0xff]  ;;  %v5695_v6 = vld [vmem:[#allocation10 + $0x140] sm:$0xff] }
 0x298   :  { %v1868_v24 = vadd.f32 %v1865_v13, %v1343_v42  ;;  %2233 = vmatmul.bf16.vlgmr.msrb.gmra.mxu3 %v6331_v10  ;;  %v2033_v22 = vmax.f32 %v2031_v15, 0.0 }
 0x299   :  { %v2014_v4 = vpop.f32.mrf.mxu3 }
 0x29a   :  { %v2038_v18 = vmax.f32 %v1868_v24, 0.0  ;;  %v2015_v19 = vadd.f32 %v5856_v53, %v2014_v4  ;;  %v2039_v28 = vpack.c.bf16 %v2033_v22, %v2033_v22  ;;  %v5676_v53 = vld [vmem:[#allocation10 + $0xa8] sm:$0xff] }
 0x29b   :  { %2397 = vmatpush.bf16.msra.mxu2 %v5676_v53  ;;  %v5871_v22 = vld [vmem:[#allocation5 + $0x10] sm:$0xff] }
 0x29c   :  { %v2044_v23 = vpack.c.bf16 %v2038_v18, %v2038_v18  ;;  %v2029_v32 = vadd.f32 %v2028_v20, %v2015_v19  ;;  %v2047_v31 = vunpack.c.l.b16 %v2039_v28  ;;  %v5726_v19 = vld [vmem:[#allocation10 + $0x238] sm:$0xff]  ;;  %v5715_v28 = vld [vmem:[#allocation10 + $0x1e0] sm:$0xff] }
 0x29d   :  { %v5718_v20 = vld [vmem:[#allocation10 + $0x1f8] sm:$0xff] }
 0x29e   :  { %v2448_v1 = vunpack.c.l.b16 %v2044_v23  ;;  %v2032_v26 = vadd.f32 %v2029_v32, %v949_v21  ;;  %v5725_v23 = vld [vmem:[#allocation10 + $0x230] sm:$0xff] }
 0x29f   :  { %2398 = vmatpush.bf16.msra.mxu2 %v5675_v55  ;;  %v5717_v32 = vld [vmem:[#allocation10 + $0x1f0] sm:$0xff] }
 0x2a0   :  { %v6336_v8 = vpack.c.b16 %v2448_v1, %v2447_v51  ;;  %v2034_v33 = vmax.f32 %v2032_v26, 0.0  ;;  %v5724_v51 = vld [vmem:[#allocation10 + $0x228] sm:$0xff]  ;;  %v5723_v26 = vld [vmem:[#allocation10 + $0x220] sm:$0xff]  ;;  %v5733_v55 = vld [vmem:[#allocation10 + $0x270] sm:$0xff] }
 0x2a1   :  { %v5716_v1 = vld [vmem:[#allocation10 + $0x1e8] sm:$0xff] }
 0x2a2   :  { %v2040_v30 = vpack.c.bf16 %v2034_v33, %v2034_v33  ;;  %2806 = vmatpush.bf16.msrb.mxu3 %v6336_v8  ;;  %v5722_v33 = vld [vmem:[#allocation10 + $0x218] sm:$0xff] }
 0x2a3   :  { %2399 = vmatpush.bf16.msra.mxu2 %v5674_v61 }
 0x2a4   :  { %v2048_v27 = vunpack.c.l.b16 %v2040_v30  ;;  %v5714_v30 = vld [vmem:[#allocation10 + $0x1d8] sm:$0xff] }
 0x2a6   :  { %v6339_v39 = vpack.c.b16 %v2048_v27, %v2047_v31  ;;  %v5872_v31 = vld [vmem:[#allocation5 + $0x18] sm:$0xff] }
 0x2a7   :  { %2400 = vmatpush.bf16.msra.mxu2 %v5673_v48  ;;  %v5721_v27 = vld [vmem:[#allocation10 + $0x210] sm:$0xff] }
 0x2a8   :  { %2058 = vmatpush.bf16.msra.mxu1 %v6339_v39  ;;  %2430 = vmatpush.bf16.msrb.mxu0 %v6339_v39 }
 0x2ab   :  { %4773 = vmatmul.msk.bf16.vlgmr.msra.gmra.mxu1 %vm165_vm0, %v5869_v34  ;;  %2401 = vmatpush.bf16.msra.mxu2 %v5672_v12  ;;  %v5720_v34 = vld [vmem:[#allocation10 + $0x208] sm:$0xff]  ;;  %v5750_v12 = vld [vmem:[#allocation10 + $0x2f8] sm:$0xff] }
 0x2ac   :  { %2246 = vmatpush.bf16.msrb.mxu1 %v6331_v10 }
 0x2af   :  { %2402 = vmatpush.bf16.msra.mxu2 %v5671_v46  ;;  %v5730_v46 = vld [vmem:[#allocation10 + $0x258] sm:$0xff] }
 0x2b0   :  { %2409 = vmatpush.bf16.msra.mxu1 %v5686_v50  ;;  %v5713_v50 = vld [vmem:[#allocation10 + $0x1d0] sm:$0xff] }
 0x2b3   :  { %2599 = vmatpush.bf16.msrb.mxu2 %v5702_v59 }
 0x2b4   :  { %2410 = vmatpush.bf16.msra.mxu1 %v5685_v35  ;;  %v5712_v35 = vld [vmem:[#allocation10 + $0x1c8] sm:$0xff] }
 0x2b7   :  { %2600 = vmatpush.bf16.msrb.mxu2 %v5701_v52  ;;  %v5873_v52 = vld [vmem:[#allocation5 + $0x20] sm:$0xff] }
 0x2b8   :  { %2411 = vmatpush.bf16.msra.mxu1 %v5684_v36  ;;  %v5719_v36 = vld [vmem:[#allocation10 + $0x200] sm:$0xff] }
 0x2bb   :  { %4838 = vmatmul.msk.bf16.vlgmr.msrb.gmra.mxu1 %vm165_vm0, %v5870_v38  ;;  %2601 = vmatpush.bf16.msrb.mxu2 %v5700_v62  ;;  %v5749_v62 = vld [vmem:[#allocation10 + $0x2f0] sm:$0xff] }
 0x2bc   :  { %2412 = vmatpush.bf16.msra.mxu1 %v5683_v47  ;;  %v5711_v47 = vld [vmem:[#allocation10 + $0x1c0] sm:$0xff] }
 0x2bf   :  { %2602 = vmatpush.bf16.msrb.mxu2 %v5699_v25  ;;  %v5729_v25 = vld [vmem:[#allocation10 + $0x250] sm:$0xff] }
 0x2c0   :  { %2413 = vmatpush.bf16.msra.mxu1 %v5682_v37 }
 0x2c3   :  { %2603 = vmatpush.bf16.msrb.mxu2 %v5698_v63  ;;  %v5748_v63 = vld [vmem:[#allocation10 + $0x2e8] sm:$0xff] }
 0x2c4   :  { %2414 = vmatpush.bf16.msra.mxu1 %v5681_v40 }
 0x2c7   :  { %2604 = vmatpush.bf16.msrb.mxu2 %v5697_v2  ;;  %v5728_v2 = vld [vmem:[#allocation10 + $0x248] sm:$0xff] }
 0x2c8   :  { %2415 = vmatpush.bf16.msra.mxu1 %v5680_v3 }
 0x2cb   :  { %2605 = vmatpush.bf16.msrb.mxu2 %v5696_v5  ;;  %v5747_v5 = vld [vmem:[#allocation10 + $0x2e0] sm:$0xff] }
 0x2cc   :  { %2416 = vmatpush.bf16.msra.mxu1 %v5679_v41 }
 0x2cf   :  { %2417 = vmatmul.bf16.vlgmr.msra.gmra.mxu1 %v6339_v39  ;;  %2606 = vmatpush.bf16.msrb.mxu2 %v5695_v6  ;;  %v5727_v6 = vld [vmem:[#allocation10 + $0x240] sm:$0xff] }
 0x2d0   :  { %2769 = vmatpush.bf16.msrb.mxu1 %v5710_v43 }
 0x2d4   :  { %2770 = vmatpush.bf16.msrb.mxu1 %v5709_v49  ;;  %v5734_v49 = vld [vmem:[#allocation10 + $0x278] sm:$0xff] }
 0x2d8   :  { %2771 = vmatpush.bf16.msrb.mxu1 %v5708_v17 }
 0x2dc   :  { %2772 = vmatpush.bf16.msrb.mxu1 %v5707_v56  ;;  %v5732_v56 = vld [vmem:[#allocation10 + $0x268] sm:$0xff] }
 0x2e0   :  { %2773 = vmatpush.bf16.msrb.mxu1 %v5706_v0 }
 0x2e4   :  { %2774 = vmatpush.bf16.msrb.mxu1 %v5705_v57 }
 0x2e8   :  { %2775 = vmatpush.bf16.msrb.mxu1 %v5704_v58  ;;  %v5731_v58 = vld [vmem:[#allocation10 + $0x260] sm:$0xff] }
 0x2ec   :  { %2776 = vmatpush.bf16.msrb.mxu1 %v5703_v60 }
 0x2f0   :  { %2992 = vmatpush.bf16.msra.mxu1 %v6331_v10 }
 0x328   :  { %v2060_v7 = vpop.f32.mrf.mxu1 }
 0x329   :  { %v2065_v9 = vpack.c.bf16 %v2060_v7, %v2060_v7  ;;  %v5746_v7 = vld [vmem:[#allocation10 + $0x2d8] sm:$0xff] }
 0x32b   :  { %v2069_v42 = vunpack.c.l.b16 %v2065_v9  ;;  %v5874_v9 = vld [vmem:[#allocation5 + $0x28] sm:$0xff] }
 0x330   :  { %v2062_v29 = vpop.f32.mrf.mxu1 }
 0x331   :  { %v2066_v11 = vpack.c.bf16 %v2062_v29, %v2062_v29  ;;  %v5745_v29 = vld [vmem:[#allocation10 + $0x2d0] sm:$0xff] }
 0x333   :  { %v2070_v13 = vunpack.c.l.b16 %v2066_v11  ;;  %v5744_v11 = vld [vmem:[#allocation10 + $0x2c8] sm:$0xff] }
 0x335   :  { %v2071_v14 = vpack.c.b16 %v2070_v13, %v2069_v42  ;;  %v5743_v42 = vld [vmem:[#allocation10 + $0x2c0] sm:$0xff]  ;;  %v5782_v13 = vld [vmem:[#allocation10 + $0x3f8] sm:$0xff] }
 0x337   :  { %2219 = vmatmul.bf16.vlgmr.msra.gmra.mxu0 %v2071_v14  ;;  %v5781_v14 = vld [vmem:[#allocation10 + $0x3f0] sm:$0xff] }
 0x338   :  { %2620 = vmatpush.bf16.msra.mxu0 %v6336_v8  ;;  %v2248_v54 = vpop.f32.mrf.mxu1 }
 0x339   :  { %v2253_v15 = vpack.c.bf16 %v2248_v54, %v2248_v54  ;;  %v5780_v54 = vld [vmem:[#allocation10 + $0x3e8] sm:$0xff] }
 0x33b   :  { %v2257_v4 = vunpack.c.l.b16 %v2253_v15  ;;  %v5779_v15 = vld [vmem:[#allocation10 + $0x3e0] sm:$0xff] }
 0x340   :  { %v2250_v24 = vpop.f32.mrf.mxu1 }
 0x341   :  { %v2254_v16 = vpack.c.bf16 %v2250_v24, %v2250_v24  ;;  %v5778_v24 = vld [vmem:[#allocation10 + $0x3d8] sm:$0xff] }
 0x343   :  { %v2258_v18 = vunpack.c.l.b16 %v2254_v16  ;;  %v5776_v16 = vld [vmem:[#allocation10 + $0x3c8] sm:$0xff] }
 0x345   :  { %v2259_v21 = vpack.c.b16 %v2258_v18, %v2257_v4  ;;  %v5777_v4 = vld [vmem:[#allocation10 + $0x3d0] sm:$0xff]  ;;  %v5775_v18 = vld [vmem:[#allocation10 + $0x3c0] sm:$0xff] }
 0x347   :  { %2403 = vmatmul.bf16.vlgmr.msra.gmra.mxu2 %v2259_v21  ;;  %4903 = vmatmul.msk.bf16.vlgmr.msrb.gmra.mxu0 %vm165_vm0, %v5871_v22  ;;  %v5813_v21 = vld [vmem:[#allocation10 + $0x4f0] sm:$0xff] }
 0x348   :  { %2955 = vmatpush.bf16.msra.mxu2 %v5726_v19  ;;  %2783 = vmatpush.bf16.msrb.mxu0 %v5718_v20  ;;  %v5814_v19 = vld [vmem:[#allocation10 + $0x4f8] sm:$0xff]  ;;  %v5741_v22 = vld [vmem:[#allocation10 + $0x2b0] sm:$0xff] }
 0x349   :  { %v5742_v20 = vld [vmem:[#allocation10 + $0x2b8] sm:$0xff] }
 0x34c   :  { %2956 = vmatpush.bf16.msra.mxu2 %v5725_v23  ;;  %2784 = vmatpush.bf16.msrb.mxu0 %v5717_v32  ;;  %v5812_v23 = vld [vmem:[#allocation10 + $0x4e8] sm:$0xff] }
 0x34d   :  { %v5740_v32 = vld [vmem:[#allocation10 + $0x2a8] sm:$0xff] }
 0x350   :  { %2957 = vmatpush.bf16.msra.mxu2 %v5724_v51  ;;  %2785 = vmatpush.bf16.msrb.mxu0 %v5716_v1  ;;  %v5811_v51 = vld [vmem:[#allocation10 + $0x4e0] sm:$0xff] }
 0x351   :  { %v5739_v1 = vld [vmem:[#allocation10 + $0x2a0] sm:$0xff] }
 0x354   :  { %2958 = vmatpush.bf16.msra.mxu2 %v5723_v26  ;;  %2786 = vmatpush.bf16.msrb.mxu0 %v5715_v28  ;;  %v5810_v26 = vld [vmem:[#allocation10 + $0x4d8] sm:$0xff]  ;;  %v5809_v28 = vld [vmem:[#allocation10 + $0x4d0] sm:$0xff] }
 0x357   :  { %2607 = vmatmul.bf16.vlgmr.msrb.gmra.mxu2 %v6336_v8  ;;  %4968 = vmatmul.msk.bf16.vlgmr.msra.gmra.mxu0 %vm165_vm0, %v5872_v31  ;;  %v5807_v31 = vld [vmem:[#allocation10 + $0x4c0] sm:$0xff] }
 0x358   :  { %2959 = vmatpush.bf16.msra.mxu2 %v5722_v33  ;;  %2787 = vmatpush.bf16.msrb.mxu0 %v5714_v30  ;;  %v5808_v33 = vld [vmem:[#allocation10 + $0x4c8] sm:$0xff]  ;;  %v5738_v30 = vld [vmem:[#allocation10 + $0x298] sm:$0xff] }
 0x35c   :  { %2960 = vmatpush.bf16.msra.mxu2 %v5721_v27  ;;  %2788 = vmatpush.bf16.msrb.mxu0 %v5713_v50  ;;  %v5737_v27 = vld [vmem:[#allocation10 + $0x290] sm:$0xff]  ;;  %v5736_v50 = vld [vmem:[#allocation10 + $0x288] sm:$0xff] }
 0x360   :  { %2961 = vmatpush.bf16.msra.mxu2 %v5720_v34  ;;  %2789 = vmatpush.bf16.msrb.mxu0 %v5712_v35  ;;  %v5735_v34 = vld [vmem:[#allocation10 + $0x280] sm:$0xff]  ;;  %v5774_v35 = vld [vmem:[#allocation10 + $0x3b8] sm:$0xff] }
 0x364   :  { %2962 = vmatpush.bf16.msra.mxu2 %v5719_v36  ;;  %2790 = vmatpush.bf16.msrb.mxu0 %v5711_v47  ;;  %v6364_v36 = vpop.f32.mrf.mxu3  ;;  %v5773_v47 = vld [vmem:[#allocation10 + $0x3b0] sm:$0xff] }
 0x367   :  { %2791 = vmatmul.bf16.vlgmr.msrb.gmra.mxu0 %v6339_v39 }
 0x368   :  { %3178 = vmatpush.bf16.msrb.mxu2 %v6331_v10  ;;  %3141 = vmatpush.bf16.msra.mxu0 %v5742_v20 }
 0x36c   :  { %3142 = vmatpush.bf16.msra.mxu0 %v5741_v22  ;;  %v5764_v22 = vld [vmem:[#allocation10 + $0x368] sm:$0xff] }
 0x370   :  { %3143 = vmatpush.bf16.msra.mxu0 %v5740_v32  ;;  %v5806_v32 = vld [vmem:[#allocation10 + $0x4b8] sm:$0xff] }
 0x374   :  { %3144 = vmatpush.bf16.msra.mxu0 %v5739_v1  ;;  %v5763_v1 = vld [vmem:[#allocation10 + $0x360] sm:$0xff] }
 0x378   :  { %3145 = vmatpush.bf16.msra.mxu0 %v5738_v30  ;;  %v5875_v30 = vld [vmem:[#allocation5 + $0x30] sm:$0xff] }
 0x37c   :  { %3146 = vmatpush.bf16.msra.mxu0 %v5737_v27  ;;  %v5803_v27 = vld [vmem:[#allocation10 + $0x4a0] sm:$0xff] }
 0x380   :  { %3147 = vmatpush.bf16.msra.mxu0 %v5736_v50  ;;  %v5760_v50 = vld [vmem:[#allocation10 + $0x348] sm:$0xff] }
 0x384   :  { %3148 = vmatpush.bf16.msra.mxu0 %v5735_v34  ;;  %v5802_v34 = vld [vmem:[#allocation10 + $0x498] sm:$0xff] }
 0x388   :  { %3491 = vmatpush.bf16.msrb.mxu0 %v5774_v35  ;;  %v5759_v35 = vld [vmem:[#allocation10 + $0x340] sm:$0xff] }
 0x38c   :  { %3492 = vmatpush.bf16.msrb.mxu0 %v5773_v47  ;;  %v5798_v47 = vld [vmem:[#allocation10 + $0x478] sm:$0xff] }
 0x3b4   :  { %v6354_v37 = vpop.f32.mrf.mxu0 }
 0x3bc   :  { %v6356_v38 = vpop.f32.mrf.mxu0 }
 0x3c4   :  { %v2432_v40 = vpop.f32.mrf.mxu0 }
 0x3c5   :  { %v2437_v3 = vpack.c.bf16 %v2432_v40, %v2432_v40  ;;  %v5772_v40 = vld [vmem:[#allocation10 + $0x3a8] sm:$0xff] }
 0x3c6   :  { %3493 = vmatpush.bf16.msrb.mxu0 %v5772_v40  ;;  %v5801_v40 = vld [vmem:[#allocation10 + $0x490] sm:$0xff] }
 0x3c7   :  { %v2441_v44 = vunpack.c.l.b16 %v2437_v3  ;;  %v6366_v3 = vpop.f32.mrf.mxu3 }
 0x3cc   :  { %v2434_v41 = vpop.f32.mrf.mxu0 }
 0x3cd   :  { %v2438_v43 = vpack.c.bf16 %v2434_v41, %v2434_v41  ;;  %v2418_v41 = vpop.f32.mrf.mxu1 }
 0x3cf   :  { %v2442_v45 = vunpack.c.l.b16 %v2438_v43  ;;  %v5771_v43 = vld [vmem:[#allocation10 + $0x3a0] sm:$0xff] }
 0x3d0   :  { %3494 = vmatpush.bf16.msrb.mxu0 %v5771_v43  ;;  %v5800_v43 = vld [vmem:[#allocation10 + $0x488] sm:$0xff] }
 0x3d1   :  { %v2443_v53 = vpack.c.b16 %v2442_v45, %v2441_v44  ;;  %v5770_v44 = vld [vmem:[#allocation10 + $0x398] sm:$0xff] }
 0x3d3   :  { %2593 = vmatmul.bf16.vlgmr.msra.gmra.mxu3 %v2443_v53 }
 0x3d4   :  { %v2622_v17 = vpop.f32.mrf.mxu0  ;;  %2969 = vmatpush.bf16.msra.mxu3 %v5734_v49  ;;  %3495 = vmatpush.bf16.msrb.mxu0 %v5770_v44  ;;  %v5769_v49 = vld [vmem:[#allocation10 + $0x390] sm:$0xff]  ;;  %v5796_v44 = vld [vmem:[#allocation10 + $0x468] sm:$0xff] }
 0x3d5   :  { %v2627_v0 = vpack.c.bf16 %v2622_v17, %v2622_v17  ;;  %v2420_v53 = vpop.f32.mrf.mxu1  ;;  %v2404_v17 = vpop.f32.mrf.mxu2 }
 0x3d7   :  { %v2631_v60 = vunpack.c.l.b16 %v2627_v0  ;;  %v5860_v0 = vld [vmem:[#allocation11 + $0x3] ss:$0 sm:$0xff] }
 0x3d8   :  { %2970 = vmatpush.bf16.msra.mxu3 %v5733_v55  ;;  %3496 = vmatpush.bf16.msrb.mxu0 %v5769_v49  ;;  %v5768_v55 = vld [vmem:[#allocation10 + $0x388] sm:$0xff]  ;;  %v5799_v49 = vld [vmem:[#allocation10 + $0x480] sm:$0xff] }
 0x3dc   :  { %v2624_v57 = vpop.f32.mrf.mxu0  ;;  %2971 = vmatpush.bf16.msra.mxu3 %v5732_v56  ;;  %v5858_v56 = vld [vmem:[#allocation11 + $0x1] ss:$0 sm:$0xff]  ;;  %3497 = vmatpush.bf16.msrb.mxu0 %v5768_v55  ;;  %v5758_v55 = vld [vmem:[#allocation10 + $0x338] sm:$0xff] }
 0x3dd   :  { %v2628_v61 = vpack.c.bf16 %v2624_v57, %v2624_v57 }
 0x3df   :  { %v2632_v48 = vunpack.c.l.b16 %v2628_v61 }
 0x3e0   :  { %2972 = vmatpush.bf16.msra.mxu3 %v5731_v58  ;;  %v5767_v58 = vld [vmem:[#allocation10 + $0x380] sm:$0xff] }
 0x3e1   :  { %v2633_v59 = vpack.c.b16 %v2632_v48, %v2631_v60  ;;  %v2405_v60 = vadd.f32 %v5858_v56, %v2404_v17  ;;  %3498 = vmatpush.bf16.msrb.mxu0 %v5767_v58  ;;  %v5794_v17 = vld [vmem:[#allocation10 + $0x458] sm:$0xff]  ;;  %v5792_v58 = vld [vmem:[#allocation10 + $0x448] sm:$0xff] }
 0x3e3   :  { %2777 = vmatmul.bf16.vlgmr.msrb.gmra.mxu1 %v2633_v59  ;;  %5033 = vmatmul.msk.bf16.vlgmr.msrb.gmra.mxu3 %vm165_vm0, %v5873_v52  ;;  %v2406_v52 = vpop.f32.mrf.mxu2 }
 0x3e4   :  { %3155 = vmatpush.bf16.msrb.mxu1 %v5750_v12  ;;  %2973 = vmatpush.bf16.msra.mxu3 %v5730_v46  ;;  %v2792_v61 = vpop.f32.mrf.mxu0  ;;  %v2419_v46 = vadd.f32 %v2418_v41, %v2405_v60  ;;  %v5797_v41 = vld [vmem:[#allocation10 + $0x470] sm:$0xff]  ;;  %v5791_v60 = vld [vmem:[#allocation10 + $0x440] sm:$0xff] }
 0x3e8   :  { %3156 = vmatpush.bf16.msrb.mxu1 %v5749_v62  ;;  %2974 = vmatpush.bf16.msra.mxu3 %v5729_v25 }
 0x3ec   :  { %3157 = vmatpush.bf16.msrb.mxu1 %v5748_v63  ;;  %2975 = vmatpush.bf16.msra.mxu3 %v5728_v2  ;;  %v2407_v63 = vadd.f32 %v5858_v56, %v2406_v52  ;;  %v5793_v56 = vld [vmem:[#allocation10 + $0x450] sm:$0xff]  ;;  %v5790_v52 = vld [vmem:[#allocation10 + $0x438] sm:$0xff] }
 0x3f0   :  { %3158 = vmatpush.bf16.msrb.mxu1 %v5747_v5  ;;  %2976 = vmatpush.bf16.msra.mxu3 %v5727_v6  ;;  %v2794_v6 = vpop.f32.mrf.mxu0 }
 0x3f3   :  { %2977 = vmatmul.bf16.vlgmr.msra.gmra.mxu3 %v6331_v10  ;;  %5098 = vmatmul.msk.bf16.vlgmr.msra.gmra.mxu1 %vm165_vm0, %v5874_v9 }
 0x3f4   :  { %3159 = vmatpush.bf16.msrb.mxu1 %v5746_v7  ;;  %v2421_v7 = vadd.f32 %v2420_v53, %v2407_v63  ;;  %v5795_v53 = vld [vmem:[#allocation10 + $0x460] sm:$0xff]  ;;  %3327 = vmatpush.bf16.msrb.mxu3 %v5758_v55  ;;  %v5788_v63 = vld [vmem:[#allocation10 + $0x428] sm:$0xff] }
 0x3f8   :  { %3160 = vmatpush.bf16.msrb.mxu1 %v5745_v29 }
 0x3fc   :  { %3161 = vmatpush.bf16.msrb.mxu1 %v5744_v11 }
 0x400   :  { %3162 = vmatpush.bf16.msrb.mxu1 %v5743_v42 }
 0x403   :  { %3163 = vmatmul.bf16.vlgmr.msrb.gmra.mxu1 %v6336_v8 }
 0x404   :  { %3505 = vmatpush.bf16.msra.mxu1 %v5782_v13 }
 0x408   :  { %3506 = vmatpush.bf16.msra.mxu1 %v5781_v14 }
 0x40c   :  { %3507 = vmatpush.bf16.msra.mxu1 %v5780_v54 }
 0x410   :  { %3508 = vmatpush.bf16.msra.mxu1 %v5779_v15 }
 0x414   :  { %3509 = vmatpush.bf16.msra.mxu1 %v5778_v24  ;;  %v5766_v24 = vld [vmem:[#allocation10 + $0x378] sm:$0xff] }
 0x418   :  { %3510 = vmatpush.bf16.msra.mxu1 %v5777_v4 }
 0x41c   :  { %3511 = vmatpush.bf16.msra.mxu1 %v5776_v16 }
 0x420   :  { %3512 = vmatpush.bf16.msra.mxu1 %v5775_v18  ;;  %v5765_v18 = vld [vmem:[#allocation10 + $0x370] sm:$0xff] }
 0x423   :  { %3513 = vmatmul.bf16.vlgmr.msra.gmra.mxu1 %v6331_v10 }
 0x424   :  { %3833 = vmatpush.bf16.msrb.mxu1 %v5814_v19 }
 0x428   :  { %3834 = vmatpush.bf16.msrb.mxu1 %v5813_v21 }
 0x42c   :  { %3835 = vmatpush.bf16.msrb.mxu1 %v5812_v23 }
 0x430   :  { %3836 = vmatpush.bf16.msrb.mxu1 %v5811_v51 }
 0x434   :  { %3837 = vmatpush.bf16.msrb.mxu1 %v5810_v26  ;;  %v5805_v26 = vld [vmem:[#allocation10 + $0x4b0] sm:$0xff] }
 0x438   :  { %3838 = vmatpush.bf16.msrb.mxu1 %v5809_v28  ;;  %v5762_v28 = vld [vmem:[#allocation10 + $0x358] sm:$0xff] }
 0x43c   :  { %3839 = vmatpush.bf16.msrb.mxu1 %v5808_v33  ;;  %v5804_v33 = vld [vmem:[#allocation10 + $0x4a8] sm:$0xff] }
 0x440   :  { %3840 = vmatpush.bf16.msrb.mxu1 %v5807_v31  ;;  %v5761_v31 = vld [vmem:[#allocation10 + $0x350] sm:$0xff] }
 0x443   :  { %3841 = vmatmul.bf16.vlgmr.msrb.gmra.mxu1 %v6339_v39 }
 0x456   :  { %v6368_v45 = vpop.f32.mrf.mxu3 }
 0x45e   :  { %v6370_v57 = vpop.f32.mrf.mxu3 }
 0x460   :  { %v2778_v48 = vpop.f32.mrf.mxu1 }
 0x461   :  { %v2779_v12 = vadd.f32 %v5860_v0, %v2778_v48  ;;  %v5754_v48 = vld [vmem:[#allocation10 + $0x318] sm:$0xff] }
 0x463   :  { %v2793_v59 = vadd.f32 %v2792_v61, %v2779_v12  ;;  %v5755_v61 = vld [vmem:[#allocation10 + $0x320] sm:$0xff]  ;;  %v5752_v12 = vld [vmem:[#allocation10 + $0x308] sm:$0xff] }
 0x465   :  { %v6372_v62 = vadd.f32 %v2793_v59, %v2419_v46  ;;  %v2608_v46 = vpop.f32.mrf.mxu2  ;;  %v5751_v59 = vld [vmem:[#allocation10 + $0x300] sm:$0xff] }
 0x466   :  { %v2808_v25 = vpop.f32.mrf.mxu3 }
 0x467   :  { %v2813_v29 = vpack.c.bf16 %v2808_v25, %v2808_v25  ;;  %v5789_v25 = vld [vmem:[#allocation10 + $0x430] sm:$0xff] }
 0x468   :  { %v2780_v2 = vpop.f32.mrf.mxu1 }
 0x469   :  { %v2781_v5 = vadd.f32 %v5860_v0, %v2780_v2  ;;  %v2817_v54 = vunpack.c.l.b16 %v2813_v29  ;;  %v5757_v0 = vld [vmem:[#allocation10 + $0x330] sm:$0xff]  ;;  %v5859_v29 = vld [vmem:[#allocation11 + $0x2] ss:$0 sm:$0xff] }
 0x46a   :  { %3328 = vmatpush.bf16.msrb.mxu3 %v5757_v0 }
 0x46b   :  { %v2795_v9 = vadd.f32 %v2794_v6, %v2781_v5  ;;  %v5857_v5 = vld [vmem:[#allocation11] ss:$0 sm:$0xff] }
 0x46c   :  { %v5787_v6 = vld [vmem:[#allocation10 + $0x420] sm:$0xff] }
 0x46d   :  { %v6374_v11 = vadd.f32 %v2795_v9, %v2421_v7  ;;  %v2610_v2 = vpop.f32.mrf.mxu2  ;;  %v5861_v7 = vld [vmem:[#allocation11 + $0x4] ss:$0 sm:$0xff]  ;;  %v2221_v9 = vadd.f32 %v5857_v5, %v6354_v37  ;;  %v2223_v37 = vadd.f32 %v5857_v5, %v6356_v38 }
 0x46e   :  { %v2810_v42 = vpop.f32.mrf.mxu3 }
 0x46f   :  { %v2814_v13 = vpack.c.bf16 %v2810_v42, %v2810_v42 }
 0x470   :  { %v2994_v14 = vpop.f32.mrf.mxu1 }
 0x471   :  { %v2818_v15 = vunpack.c.l.b16 %v2814_v13  ;;  %v2999_v16 = vpack.c.bf16 %v2994_v14, %v2994_v14  ;;  %v5786_v13 = vld [vmem:[#allocation10 + $0x418] sm:$0xff] }
 0x473   :  { %v2819_v4 = vpack.c.b16 %v2818_v15, %v2817_v54  ;;  %v3003_v20 = vunpack.c.l.b16 %v2999_v16  ;;  %v2235_v16 = vadd.f32 %v6364_v36, %v2221_v9  ;;  %v5819_v9 = vld [vmem:[#allocation13 + $0x20] sm:$0xff] }
 0x475   :  { %2963 = vmatmul.bf16.vlgmr.msra.gmra.mxu2 %v2819_v4  ;;  %v5785_v4 = vld [vmem:[#allocation10 + $0x410] sm:$0xff] }
 0x476   :  { %3341 = vmatpush.bf16.msra.mxu2 %v5766_v24  ;;  %v2978_v42 = vpop.f32.mrf.mxu3  ;;  %v5862_v24 = vld [vmem:[#allocation11 + $0x5] ss:$0 sm:$0xff] }
 0x478   :  { %v2996_v19 = vpop.f32.mrf.mxu1 }
 0x479   :  { %v3000_v21 = vpack.c.bf16 %v2996_v19, %v2996_v19 }
 0x47a   :  { %3342 = vmatpush.bf16.msra.mxu2 %v5765_v18  ;;  %v2595_v18 = vadd.f32 %v5859_v29, %v6368_v45  ;;  %v2237_v45 = vadd.f32 %v6366_v3, %v2223_v37 }
 0x47b   :  { %v3004_v23 = vunpack.c.l.b16 %v3000_v21 }
 0x47d   :  { %v3005_v51 = vpack.c.b16 %v3004_v23, %v3003_v20  ;;  %v2609_v23 = vadd.f32 %v2608_v46, %v2595_v18  ;;  %v5865_v18 = vld [vmem:[#allocation11 + $0x6] ss:$0 sm:$0xff] }
 0x47e   :  { %3343 = vmatpush.bf16.msra.mxu2 %v5764_v22 }
 0x47f   :  { %3149 = vmatmul.bf16.vlgmr.msra.gmra.mxu0 %v3005_v51  ;;  %v5784_v51 = vld [vmem:[#allocation10 + $0x408] sm:$0xff] }
 0x480   :  { %3819 = vmatpush.bf16.msra.mxu0 %v5806_v32  ;;  %v3164_v14 = vpop.f32.mrf.mxu1 }
 0x482   :  { %3344 = vmatpush.bf16.msra.mxu2 %v5763_v1 }
 0x484   :  { %3820 = vmatpush.bf16.msra.mxu0 %v5805_v26 }
 0x485   :  { %5163 = vmatmul.msk.bf16.vlgmr.msrb.gmra.mxu2 %vm165_vm0, %v5875_v30  ;;  %v2597_v30 = vadd.f32 %v5859_v29, %v6370_v57  ;;  %v5830_v29 = vld [vmem:[#allocation13 + $0x78] sm:$0xff] }
 0x486   :  { %3345 = vmatpush.bf16.msra.mxu2 %v5762_v28 }
 0x488   :  { %3821 = vmatpush.bf16.msra.mxu0 %v5804_v33  ;;  %v2980_v33 = vpop.f32.mrf.mxu3  ;;  %v3166_v36 = vpop.f32.mrf.mxu1 }
 0x48a   :  { %3346 = vmatpush.bf16.msra.mxu2 %v5761_v31 }
 0x48c   :  { %3822 = vmatpush.bf16.msra.mxu0 %v5803_v27  ;;  %v5783_v27 = vld [vmem:[#allocation10 + $0x400] sm:$0xff] }
 0x48e   :  { %3347 = vmatpush.bf16.msra.mxu2 %v5760_v50 }
 0x48f   :  { %3499 = vmatmul.bf16.vlgmr.msrb.gmra.mxu0 %v6331_v10 }
 0x490   :  { %3823 = vmatpush.bf16.msra.mxu0 %v5802_v34 }
 0x492   :  { %3348 = vmatpush.bf16.msra.mxu2 %v5759_v35  ;;  %v2611_v35 = vadd.f32 %v2610_v2, %v2597_v30 }
 0x494   :  { %3824 = vmatpush.bf16.msra.mxu0 %v5801_v40 }
 0x495   :  { %3349 = vmatmul.bf16.vlgmr.msra.gmra.mxu2 %v6331_v10  ;;  %v5756_v10 = vld [vmem:[#allocation10 + $0x328] sm:$0xff] }
 0x496   :  { %3669 = vmatpush.bf16.msrb.mxu2 %v5798_v47  ;;  %3329 = vmatpush.bf16.msrb.mxu3 %v5756_v10 }
 0x498   :  { %3825 = vmatpush.bf16.msra.mxu0 %v5800_v43 }
 0x49a   :  { %3670 = vmatpush.bf16.msrb.mxu2 %v5797_v41  ;;  %3330 = vmatpush.bf16.msrb.mxu3 %v5755_v61 }
 0x49c   :  { %3826 = vmatpush.bf16.msra.mxu0 %v5799_v49 }
 0x49e   :  { %3671 = vmatpush.bf16.msrb.mxu2 %v5796_v44  ;;  %3331 = vmatpush.bf16.msrb.mxu3 %v5754_v48  ;;  %v5822_v48 = vld [vmem:[#allocation13 + $0x38] sm:$0xff] }
 0x49f   :  { %3827 = vmatmul.bf16.vlgmr.msra.gmra.mxu0 %v6339_v39  ;;  %v5753_v39 = vld [vmem:[#allocation10 + $0x310] sm:$0xff] }
 0x4a0   :  { %v6395_v43 = vpop.f32.mrf.mxu1 }
 0x4a2   :  { %3672 = vmatpush.bf16.msrb.mxu2 %v5795_v53  ;;  %3332 = vmatpush.bf16.msrb.mxu3 %v5753_v39 }
 0x4a6   :  { %3673 = vmatpush.bf16.msrb.mxu2 %v5794_v17  ;;  %3333 = vmatpush.bf16.msrb.mxu3 %v5752_v12  ;;  %v5821_v12 = vld [vmem:[#allocation13 + $0x30] sm:$0xff] }
 0x4a8   :  { %v6397_v55 = vpop.f32.mrf.mxu1 }
 0x4aa   :  { %3674 = vmatpush.bf16.msrb.mxu2 %v5793_v56  ;;  %3334 = vmatpush.bf16.msrb.mxu3 %v5751_v59 }
 0x4ae   :  { %3675 = vmatpush.bf16.msrb.mxu2 %v5792_v58  ;;  %3655 = vmatpush.bf16.msra.mxu3 %v5790_v52  ;;  %v5864_v58 = vld [vmem:[#allocation11 + $0x9] ss:$0 sm:$0xff] }
 0x4b2   :  { %3676 = vmatpush.bf16.msrb.mxu2 %v5791_v60  ;;  %3656 = vmatpush.bf16.msra.mxu3 %v5789_v25  ;;  %v5820_v25 = vld [vmem:[#allocation13 + $0x28] sm:$0xff] }
 0x4b5   :  { %3677 = vmatmul.bf16.vlgmr.msrb.gmra.mxu2 %v6336_v8 }
 0x4b6   :  { %3657 = vmatpush.bf16.msra.mxu3 %v5788_v63  ;;  %4013 = vmatpush.bf16.msra.mxu2 %v5830_v29 }
 0x4ba   :  { %3658 = vmatpush.bf16.msra.mxu3 %v5787_v6 }
 0x4be   :  { %3659 = vmatpush.bf16.msra.mxu3 %v5786_v13  ;;  %v5817_v13 = vld [vmem:[#allocation13 + $0x10] sm:$0xff] }
 0x4c0   :  { %v3842_v10 = vpop.f32.mrf.mxu1 }
 0x4c2   :  { %3660 = vmatpush.bf16.msra.mxu3 %v5785_v4  ;;  %v5824_v4 = vld [vmem:[#allocation13 + $0x48] sm:$0xff] }
 0x4c6   :  { %3661 = vmatpush.bf16.msra.mxu3 %v5784_v51 }
 0x4c8   :  { %v3844_v2 = vpop.f32.mrf.mxu1 }
 0x4ca   :  { %3662 = vmatpush.bf16.msra.mxu3 %v5783_v27 }
 0x4f8   :  { %v2964_v54 = vpop.f32.mrf.mxu2 }
 0x4f9   :  { %v2965_v15 = vadd.f32 %v5861_v7, %v2964_v54  ;;  %v5816_v54 = vld [vmem:[#allocation13 + $0x8] sm:$0xff] }
 0x4fb   :  { %v2979_v19 = vadd.f32 %v2978_v42, %v2965_v15  ;;  %v5829_v42 = vld [vmem:[#allocation13 + $0x70] sm:$0xff]  ;;  %v5815_v15 = vld [vmem:[#allocation13] sm:$0xff] }
 0x4fc   :  { %v3150_v20 = vpop.f32.mrf.mxu0  ;;  %4014 = vmatpush.bf16.msra.mxu2 %v5829_v42 }
 0x4fd   :  { %v6384_v21 = vadd.f32 %v2979_v19, %v2235_v16  ;;  %v3151_v22 = vadd.f32 %v5862_v24, %v3150_v20  ;;  %v5863_v16 = vld [vmem:[#allocation11 + $0x7] ss:$0 sm:$0xff]  ;;  %v5823_v20 = vld [vmem:[#allocation13 + $0x40] sm:$0xff] }
 0x4ff   :  { %v3165_v32 = vadd.f32 %v3164_v14, %v3151_v22  ;;  %v5828_v14 = vld [vmem:[#allocation13 + $0x68] sm:$0xff] }
 0x500   :  { %v2966_v1 = vpop.f32.mrf.mxu2  ;;  %4015 = vmatpush.bf16.msra.mxu2 %v5828_v14 }
 0x501   :  { %v6387_v26 = vadd.f32 %v3165_v32, %v2609_v23  ;;  %v2967_v28 = vadd.f32 %v5861_v7, %v2966_v1 }
 0x503   :  { %v2981_v31 = vadd.f32 %v2980_v33, %v2967_v28 }
 0x504   :  { %v3152_v50 = vpop.f32.mrf.mxu0 }
 0x505   :  { %v6391_v34 = vadd.f32 %v2981_v31, %v2237_v45  ;;  %v3153_v38 = vadd.f32 %v5862_v24, %v3152_v50  ;;  %v5825_v24 = vld [vmem:[#allocation13 + $0x50] sm:$0xff] }
 0x507   :  { %v3167_v47 = vadd.f32 %v3166_v36, %v3153_v38 }
 0x508   :  { %v3180_v40 = vpop.f32.mrf.mxu2 }
 0x509   :  { %v6393_v41 = vadd.f32 %v3167_v47, %v2611_v35  ;;  %v3185_v49 = vpack.c.bf16 %v3180_v40, %v3180_v40  ;;  %v5866_v35 = vld [vmem:[#allocation11 + $0x8] ss:$0 sm:$0xff] }
 0x50b   :  { %v3189_v17 = vunpack.c.l.b16 %v3185_v49 }
 0x50c   :  { %v3500_v44 = vpop.f32.mrf.mxu0 }
 0x50d   :  { %v3501_v37 = vadd.f32 %v5863_v16, %v3500_v44 }
 0x50f   :  { %v3515_v51 = vadd.f32 %v6395_v43, %v3501_v37 }
 0x510   :  { %v3182_v53 = vpop.f32.mrf.mxu2 }
 0x511   :  { %v3186_v3 = vpack.c.bf16 %v3182_v53, %v3182_v53 }
 0x513   :  { %v3190_v57 = vunpack.c.l.b16 %v3186_v3 }
 0x514   :  { %v6399_v56 = vpop.f32.mrf.mxu0 }
 0x515   :  { %v3191_v0 = vpack.c.b16 %v3190_v57, %v3189_v17  ;;  %v3503_v45 = vadd.f32 %v5863_v16, %v6399_v56 }
 0x517   :  { %3335 = vmatmul.bf16.vlgmr.msrb.gmra.mxu3 %v3191_v0  ;;  %v3517_v27 = vadd.f32 %v6397_v55, %v3503_v45 }
 0x518   :  { %3926 = vmatpush.bf16.msrb.mxu3 %v5822_v48  ;;  %v3350_v19 = vpop.f32.mrf.mxu2 }
 0x51c   :  { %v3828_v60 = vpop.f32.mrf.mxu0  ;;  %3927 = vmatpush.bf16.msrb.mxu3 %v5821_v12 }
 0x51d   :  { %v3829_v61 = vadd.f32 %v5864_v58, %v3828_v60 }
 0x51f   :  { %v3843_v39 = vadd.f32 %v3842_v10, %v3829_v61 }
 0x520   :  { %3928 = vmatpush.bf16.msrb.mxu3 %v5820_v25  ;;  %v3352_v33 = vpop.f32.mrf.mxu2 }
 0x521   :  { %v3847_v46 = vadd.f32 %v3843_v39, %v6372_v62  ;;  %v5818_v62 = vld [vmem:[#allocation13 + $0x18] sm:$0xff] }
 0x522   :  { %v5868_v39 = vld [vmem:[%s6442_s7 + $0x1] ss:$0 sm:$0xff] }
 0x523   :  { %v3849_v59 = vmax.f32 %v3847_v46, 0.0 }
 0x524   :  { %v3830_v52 = vpop.f32.mrf.mxu0  ;;  %3929 = vmatpush.bf16.msrb.mxu3 %v5819_v9 }
 0x525   :  { %3855 = vst [vmem:[#allocation14] sm:$0xff] %v3849_v59  ;;  %v3831_v63 = vadd.f32 %v5864_v58, %v3830_v52 }
 0x527   :  { %v3845_v5 = vadd.f32 %v3844_v2, %v3831_v63  ;;  %3663 = vmatmul.bf16.vlgmr.msra.gmra.mxu3 %v6336_v8  ;;  %v5827_v8 = vld [vmem:[#allocation13 + $0x60] sm:$0xff] }
 0x528   :  { %3930 = vmatpush.bf16.msrb.mxu3 %v5818_v62  ;;  %4016 = vmatpush.bf16.msra.mxu2 %v5827_v8 }
 0x529   :  { %v3848_v6 = vadd.f32 %v3845_v5, %v6374_v11  ;;  %v5826_v11 = vld [vmem:[#allocation13 + $0x58] sm:$0xff] }
 0x52b   :  { %v3850_v7 = vmax.f32 %v3848_v6, 0.0 }
 0x52c   :  { %3931 = vmatpush.bf16.msrb.mxu3 %v5817_v13  ;;  %4017 = vmatpush.bf16.msra.mxu2 %v5826_v11 }
 0x52d   :  { %3856 = vst [vmem:[#allocation14 + $0x8] sm:$0xff] %v3850_v7 }
 0x52e   :  { %4041 = dma.vmem_to_hbm [thread:$0]  %s4034_s28, 256, %s4036_s22, [#allocation4], %s6140_s29, %s6140_s29, %s6141_s3  }
 0x530   :  { %3932 = vmatpush.bf16.msrb.mxu3 %v5816_v54  ;;  %4018 = vmatpush.bf16.msra.mxu2 %v5825_v24 }
 0x534   :  { %3933 = vmatpush.bf16.msrb.mxu3 %v5815_v15  ;;  %4019 = vmatpush.bf16.msra.mxu2 %v5824_v4 }
 0x538   :  { %4020 = vmatpush.bf16.msra.mxu2 %v5823_v20  ;;  %v3678_v47 = vpop.f32.mrf.mxu2 }
 0x540   :  { %v3680_v57 = vpop.f32.mrf.mxu2 }
 0x59a   :  { %v3336_v22 = vpop.f32.mrf.mxu3 }
 0x59b   :  { %v3337_v23 = vadd.f32 %v5865_v18, %v3336_v22 }
 0x59d   :  { %v3351_v32 = vadd.f32 %v3350_v19, %v3337_v23 }
 0x59f   :  { %v3355_v1 = vadd.f32 %v3351_v32, %v6384_v21 }
 0x5a1   :  { %v3519_v28 = vadd.f32 %v3515_v51, %v3355_v1 }
 0x5a2   :  { %v3338_v36 = vpop.f32.mrf.mxu3 }
 0x5a3   :  { %v3339_v30 = vadd.f32 %v5865_v18, %v3338_v36  ;;  %v3851_v44 = vmax.f32 %v3519_v28, 0.0 }
 0x5a5   :  { %v3353_v31 = vadd.f32 %v3352_v33, %v3339_v30 }
 0x5a7   :  { %v3356_v50 = vadd.f32 %v3353_v31, %v6391_v34 }
 0x5a9   :  { %v3520_v38 = vadd.f32 %v3517_v27, %v3356_v50 }
 0x5aa   :  { %v3664_v40 = vpop.f32.mrf.mxu3 }
 0x5ab   :  { %v3852_v49 = vmax.f32 %v3520_v38, 0.0  ;;  %v3665_v53 = vadd.f32 %v5866_v35, %v3664_v40 }
 0x5ad   :  { %v3857_v43 = vpack.c.bf16 %v3852_v49, %v3851_v44  ;;  %v3679_v21 = vadd.f32 %v3678_v47, %v3665_v53 }
 0x5af   :  { %3934 = vmatmul.bf16.vlgmr.msrb.gmra.mxu3 %v3857_v43  ;;  %v3683_v56 = vadd.f32 %v3679_v21, %v6387_v26  ;;  %v5867_v26 = vld [vmem:[%s6442_s7] ss:$0 sm:$0xff] }
 0x5b1   :  { %v3853_v58 = vmax.f32 %v3683_v56, 0.0 }
 0x5b2   :  { %v3666_v3 = vpop.f32.mrf.mxu3 }
 0x5b3   :  { %v3667_v17 = vadd.f32 %v5866_v35, %v3666_v3 }
 0x5b5   :  { %v3681_v0 = vadd.f32 %v3680_v57, %v3667_v17 }
 0x5b7   :  { %v3684_v55 = vadd.f32 %v3681_v0, %v6393_v41 }
 0x5b9   :  { %v3854_v34 = vmax.f32 %v3684_v55, 0.0 }
 0x5bb   :  { %v3942_v10 = vpack.c.bf16 %v3854_v34, %v3853_v58 }
 0x5bd   :  { %4021 = vmatmul.bf16.vlgmr.msra.gmra.mxu2 %v3942_v10 }
 0x632   :  { %v3935_v41 = vpop.f32.mrf.mxu3 }
 0x633   :  { %v3936_v60 = vadd.f32 %v5867_v26, %v3935_v41 }
 0x635   :  { %3940 = vst [vmem:[#allocation15] sm:$0xff] %v3936_v60 }
 0x63a   :  { %v3937_v61 = vpop.f32.mrf.mxu3 }
 0x63b   :  { %v3938_v48 = vadd.f32 %v5867_v26, %v3937_v61 }
 0x63d   :  { %3941 = vst [vmem:[#allocation15 + $0x8] sm:$0xff] %v3938_v48 }
 0x63e   :  { %4054 = dma.vmem_to_hbm [thread:$0]  %s4047_s13, 256, %s4049_s15, [#allocation16], %s6140_s29, %s6140_s29, %s6141_s3  }
 0x640   :  { %v4022_v12 = vpop.f32.mrf.mxu2 }
 0x641   :  { %v4023_v46 = vadd.f32 %v5868_v39, %v4022_v12 }
 0x643   :  { %4027 = vst [vmem:[#allocation17] sm:$0xff] %v4023_v46 }
 0x648   :  { %v4024_v59 = vpop.f32.mrf.mxu2 }
 0x649   :  { %v4025_v52 = vadd.f32 %v5868_v39, %v4024_v59 }
 0x64b   :  { %4028 = vst [vmem:[#allocation17 + $0x8] sm:$0xff] %v4025_v52 }
 0x64c   :  { %4067 = dma.vmem_to_hbm [thread:$0]  %s4060_s18, 256, %s4062_s20, [#allocation16], %s6140_s29, %s6140_s29, %s6141_s3  }
 0x64d   :  { %6124 = dma.done.wait [#allocation4], 256  }
 0x64e   :  { %6125 = vsyncadd [#allocation4], 4294967040 }
 0x64f   :  { %6126 = dma.done.wait [#allocation16], 512  }
 0x650   :  { %6127 = vsyncadd [#allocation16], 4294966784 }
 0x651   :  { %4080 = vsyncpa [#allocation3], 1 }
 0x652   :  { %4081 = vsyncpa [#allocation6], 1 }
 0x653   :  { %4082 = vsyncpa [#allocation9], 1 }
 0x654   :  { %4083 = vsyncpa [#allocation12], 1 }
 0x655   :  { %4084 = vsyncpa [#allocation4], 1 }
 0x656   :  { %4085 = vsyncpa [#allocation16], 1 }

</bundles_post_ra>
